<compile_context>
chip_gen: v7x
topology: tpu7x:2x2x1
jax: 0.10.0
libtpu: 0.0.40
codegen_flags: <defaults>
</compile_context>

<pallas_src>
import jax
import jax.numpy as jnp
from jax.experimental import pallas as pl
from jax.experimental.pallas import tpu as pltpu


# ----------------------------- Pallas kernel -------------------------------

def _conv_bn_relu_kernel(pT_ref, wT_ref, shift_ref, o_ref):
    # pT_ref:    (1, K, HW)   bf16 im2col patches (transposed) for one batch elem
    # wT_ref:    (Cout, K)    bf16 conv weight with BN scale folded in
    # shift_ref: (Cout, 1)    f32  folded conv-bias + BN shift (lane broadcast)
    # o_ref:     (1, Cout, HW) f32 conv+BN+ReLU output (lane axis = HW, dense)
    y = jnp.dot(wT_ref[...], pT_ref[0], preferred_element_type=jnp.float32)
    o_ref[0] = jnp.maximum(y + shift_ref[...], 0.0).astype(o_ref.dtype)


def conv_bn_relu(patchesT, wT, shift):
    N, K, HW = patchesT.shape
    Cout = wT.shape[0]
    return pl.pallas_call(
        _conv_bn_relu_kernel,
        out_shape=jax.ShapeDtypeStruct((N, Cout, HW), jnp.float32),
        grid=(N,),
        in_specs=[
            pl.BlockSpec((1, K, HW), lambda n: (n, 0, 0)),
            pl.BlockSpec((Cout, K), lambda n: (0, 0)),
            pl.BlockSpec((Cout, 1), lambda n: (0, 0)),
        ],
        out_specs=pl.BlockSpec((1, Cout, HW), lambda n: (n, 0, 0)),
        compiler_params=pltpu.CompilerParams(dimension_semantics=("parallel",)),
    )(patchesT, wT, shift)


# ------------------------------ JAX glue ------------------------------------

def im2col_3x3_nchw(x):
    # x: (N, C, H, W) -> (N, 9*C, H*W); patch channel order (kh, kw, ci)
    N, C, H, W = x.shape
    xp = jnp.pad(x, ((0, 0), (0, 0), (1, 1), (1, 1)))
    cols = [xp[:, :, kh:kh + H, kw:kw + W]
            for kh in range(3) for kw in range(3)]
    patches = jnp.concatenate(cols, axis=1)            # (N, 9*C, H, W)
    return patches.reshape(N, 9 * C, H * W)


def maxpool_nchw(x, k):
    # nn.MaxPool2d(k) with PyTorch floor semantics on NCHW.
    N, C, H, W = x.shape
    Ho, Wo = H // k, W // k
    x = x[:, :, : Ho * k, : Wo * k]
    x = x.reshape(N, C, Ho, k, Wo, k)
    return jnp.max(x, axis=(3, 5))


def init_convnet_params(key, depth=4, x_dim=3, hid_dim=8, z_dim=8):
    assert depth == 4
    dims = [(x_dim, hid_dim), (hid_dim, hid_dim), (hid_dim, hid_dim), (hid_dim, z_dim)]
    params = []
    for cin, cout in dims:
        key, kw, kb = jax.random.split(key, 3)
        bound = 1.0 / jnp.sqrt(9.0 * cin)
        params.append(dict(
            # weight layout (kh, kw, cin, cout); matches im2col (kh, kw, ci) order
            w=jax.random.uniform(kw, (3, 3, cin, cout), jnp.float32, -bound, bound),
            b=jax.random.uniform(kb, (cout,), jnp.float32, -bound, bound),
            gamma=jnp.ones((cout,), jnp.float32),
            beta=jnp.zeros((cout,), jnp.float32),
            mean=jnp.zeros((cout,), jnp.float32),
            var=jnp.ones((cout,), jnp.float32),
        ))
    return params


def convnet_forward(x_nchw, params, eps=1e-5):
    # x_nchw: (N, C, H, W) float32, like the PyTorch module input.
    # TODO(synk): BatchNorm is applied in inference mode (folded running stats /
    # affine); train-mode batch statistics are not computed here.
    x = x_nchw.astype(jnp.float32)
    for p in params:
        N, _, H, W = x.shape
        cout = p["w"].shape[-1]
        patchesT = im2col_3x3_nchw(x).astype(jnp.bfloat16)        # (N, 9C, HW)
        # Fold BN scale into the weight (host-side); epilogue is shift + ReLU.
        inv = p["gamma"] / jnp.sqrt(p["var"] + eps)               # (Cout,)
        wT = jnp.transpose(p["w"], (3, 0, 1, 2)).reshape(cout, -1)
        wT = (wT * inv[:, None]).astype(jnp.bfloat16)             # (Cout, 9C)
        shift = (p["beta"] + (p["b"] - p["mean"]) * inv)[:, None] # (Cout, 1) f32
        y = conv_bn_relu(patchesT, wT, shift)                     # (N, Cout, HW) [Pallas]
        y = y.reshape(N, cout, H, W)
        x = maxpool_nchw(y, 2)                                    # nn.MaxPool2d(2)
    x = maxpool_nchw(x, 5)                                        # nn.MaxPool2d(5)
    return x.reshape(x.shape[0], -1)                              # x.view(N, -1)


# --------------------------------- main --------------------------------------

if __name__ == "__main__":
    key = jax.random.PRNGKey(0)
    kp, kx = jax.random.split(key)
    # Small config: batch=2, x_dim=3, hid_dim=z_dim=8, spatial=80
    # (80 -> 40 -> 20 -> 10 -> 5 -> MaxPool2d(5) -> 1x1 -> flatten)
    params = init_convnet_params(kp, depth=4, x_dim=3, hid_dim=8, z_dim=8)
    x = jax.random.normal(kx, (2, 3, 80, 80), jnp.float32)  # NCHW like PyTorch
    fwd = jax.jit(convnet_forward)
    out = jax.block_until_ready(fwd(x, params))
    assert out.shape == (2, 8)
    print("KERNEL_OK")
</pallas_src>

<mosaic_0001>
module attributes {stable_mosaic.version = 11 : i64} {
  func.func @_conv_bn_relu_kernel(%arg0: i32, %arg1: memref<1x27x6400xbf16, #tpu.memory_space<vmem>>, %arg2: memref<8x27xbf16, #tpu.memory_space<vmem>>, %arg3: memref<8x1xf32, #tpu.memory_space<vmem>>, %arg4: memref<1x8x6400xf32, #tpu.memory_space<vmem>>) attributes {dimension_semantics = [#tpu.dimension_semantics<parallel>], iteration_bounds = array<i64: 2>, scalar_prefetch = 0 : i64, scratch_operands = 0 : i64, tpu.core_type = #tpu.core_type<tc>, window_params = [{transform_indices = @transform_0, window_bounds = array<i64: 1, 27, 6400>}, {pipeline_mode = #tpu.pipeline_mode<synchronous>, transform_indices = @transform_1, window_bounds = array<i64: 8, 27>}, {pipeline_mode = #tpu.pipeline_mode<synchronous>, transform_indices = @transform_2, window_bounds = array<i64: 8, 1>}, {transform_indices = @transform_3, window_bounds = array<i64: 1, 8, 6400>}]} {
    %c0 = arith.constant 0 : index
    %c0_0 = arith.constant 0 : index
    %0 = vector.load %arg2[%c0, %c0_0] : memref<8x27xbf16, #tpu.memory_space<vmem>>, vector<8x27xbf16>
    %c0_1 = arith.constant 0 : index
    %c0_2 = arith.constant 0 : index
    %c0_3 = arith.constant 0 : index
    %1 = vector.load %arg1[%c0_1, %c0_2, %c0_3] : memref<1x27x6400xbf16, #tpu.memory_space<vmem>>, vector<1x27x6400xbf16>
    %2 = vector.shape_cast %1 : vector<1x27x6400xbf16> to vector<27x6400xbf16>
    %cst = arith.constant dense<0.000000e+00> : vector<8x6400xf32>
    %3 = tpu.matmul %0, %2, %cst {dimension_numbers = #tpu.dot_dimension_numbers<[1], [0], [0], [1], [0, 0, 1, 1], [], []>} : vector<8x27xbf16>, vector<27x6400xbf16>, vector<8x6400xf32> -> vector<8x6400xf32>
    %c0_4 = arith.constant 0 : index
    %c0_5 = arith.constant 0 : index
    %4 = vector.load %arg3[%c0_4, %c0_5] : memref<8x1xf32, #tpu.memory_space<vmem>>, vector<8x1xf32>
    %5 = vector.broadcast %4 : vector<8x1xf32> to vector<8x6400xf32>
    %6 = arith.addf %3, %5 : vector<8x6400xf32>
    %cst_6 = arith.constant 0.000000e+00 : f32
    %7 = vector.broadcast %cst_6 : f32 to vector<8x6400xf32>
    %8 = arith.maximumf %6, %7 : vector<8x6400xf32>
    %c0_7 = arith.constant 0 : index
    %c0_8 = arith.constant 0 : index
    %c0_9 = arith.constant 0 : index
    %9 = vector.load %arg4[%c0_7, %c0_8, %c0_9] : memref<1x8x6400xf32, #tpu.memory_space<vmem>>, vector<1x8x6400xf32>
    %10 = vector.shape_cast %9 : vector<1x8x6400xf32> to vector<8x6400xf32>
    %11 = vector.shape_cast %8 : vector<8x6400xf32> to vector<1x8x6400xf32>
    tpu.vector_store %arg4[%c0_7, %c0_8, %c0_9], %11 {strides = array<i32>} : memref<1x8x6400xf32, #tpu.memory_space<vmem>>, vector<1x8x6400xf32>,
    return
  }
  func.func @transform_0(%arg0: i32) -> (i32, i32, i32) {
    %c0_i32 = arith.constant 0 : i32
    %c0_i32_0 = arith.constant 0 : i32
    %c0_i32_1 = arith.constant 0 : i32
    return %arg0, %c0_i32, %c0_i32_0 : i32, i32, i32
  }
  func.func @transform_1(%arg0: i32) -> (i32, i32) {
    %c0_i32 = arith.constant 0 : i32
    %c0_i32_0 = arith.constant 0 : i32
    %c0_i32_1 = arith.constant 0 : i32
    return %c0_i32, %c0_i32_0 : i32, i32
  }
  func.func @transform_2(%arg0: i32) -> (i32, i32) {
    %c0_i32 = arith.constant 0 : i32
    %c0_i32_0 = arith.constant 0 : i32
    %c0_i32_1 = arith.constant 0 : i32
    return %c0_i32, %c0_i32_0 : i32, i32
  }
  func.func @transform_3(%arg0: i32) -> (i32, i32, i32) {
    %c0_i32 = arith.constant 0 : i32
    %c0_i32_0 = arith.constant 0 : i32
    %c0_i32_1 = arith.constant 0 : i32
    return %arg0, %c0_i32, %c0_i32_0 : i32, i32, i32
  }
}

module attributes {stable_mosaic.version = 11 : i64} {
  func.func @_conv_bn_relu_kernel(%arg0: i32, %arg1: memref<1x72x1600xbf16, #tpu.memory_space<vmem>>, %arg2: memref<8x72xbf16, #tpu.memory_space<vmem>>, %arg3: memref<8x1xf32, #tpu.memory_space<vmem>>, %arg4: memref<1x8x1600xf32, #tpu.memory_space<vmem>>) attributes {dimension_semantics = [#tpu.dimension_semantics<parallel>], iteration_bounds = array<i64: 2>, scalar_prefetch = 0 : i64, scratch_operands = 0 : i64, tpu.core_type = #tpu.core_type<tc>, window_params = [{transform_indices = @transform_0, window_bounds = array<i64: 1, 72, 1600>}, {pipeline_mode = #tpu.pipeline_mode<synchronous>, transform_indices = @transform_1, window_bounds = array<i64: 8, 72>}, {pipeline_mode = #tpu.pipeline_mode<synchronous>, transform_indices = @transform_2, window_bounds = array<i64: 8, 1>}, {transform_indices = @transform_3, window_bounds = array<i64: 1, 8, 1600>}]} {
    %c0 = arith.constant 0 : index
    %c0_0 = arith.constant 0 : index
    %0 = vector.load %arg2[%c0, %c0_0] : memref<8x72xbf16, #tpu.memory_space<vmem>>, vector<8x72xbf16>
    %c0_1 = arith.constant 0 : index
    %c0_2 = arith.constant 0 : index
    %c0_3 = arith.constant 0 : index
    %1 = vector.load %arg1[%c0_1, %c0_2, %c0_3] : memref<1x72x1600xbf16, #tpu.memory_space<vmem>>, vector<1x72x1600xbf16>
    %2 = vector.shape_cast %1 : vector<1x72x1600xbf16> to vector<72x1600xbf16>
    %cst = arith.constant dense<0.000000e+00> : vector<8x1600xf32>
    %3 = tpu.matmul %0, %2, %cst {dimension_numbers = #tpu.dot_dimension_numbers<[1], [0], [0], [1], [0, 0, 1, 1], [], []>} : vector<8x72xbf16>, vector<72x1600xbf16>, vector<8x1600xf32> -> vector<8x1600xf32>
    %c0_4 = arith.constant 0 : index
    %c0_5 = arith.constant 0 : index
    %4 = vector.load %arg3[%c0_4, %c0_5] : memref<8x1xf32, #tpu.memory_space<vmem>>, vector<8x1xf32>
    %5 = vector.broadcast %4 : vector<8x1xf32> to vector<8x1600xf32>
    %6 = arith.addf %3, %5 : vector<8x1600xf32>
    %cst_6 = arith.constant 0.000000e+00 : f32
    %7 = vector.broadcast %cst_6 : f32 to vector<8x1600xf32>
    %8 = arith.maximumf %6, %7 : vector<8x1600xf32>
    %c0_7 = arith.constant 0 : index
    %c0_8 = arith.constant 0 : index
    %c0_9 = arith.constant 0 : index
    %9 = vector.load %arg4[%c0_7, %c0_8, %c0_9] : memref<1x8x1600xf32, #tpu.memory_space<vmem>>, vector<1x8x1600xf32>
    %10 = vector.shape_cast %9 : vector<1x8x1600xf32> to vector<8x1600xf32>
    %11 = vector.shape_cast %8 : vector<8x1600xf32> to vector<1x8x1600xf32>
    tpu.vector_store %arg4[%c0_7, %c0_8, %c0_9], %11 {strides = array<i32>} : memref<1x8x1600xf32, #tpu.memory_space<vmem>>, vector<1x8x1600xf32>,
    return
  }
  func.func @transform_0(%arg0: i32) -> (i32, i32, i32) {
    %c0_i32 = arith.constant 0 : i32
    %c0_i32_0 = arith.constant 0 : i32
    %c0_i32_1 = arith.constant 0 : i32
    return %arg0, %c0_i32, %c0_i32_0 : i32, i32, i32
  }
  func.func @transform_1(%arg0: i32) -> (i32, i32) {
    %c0_i32 = arith.constant 0 : i32
    %c0_i32_0 = arith.constant 0 : i32
    %c0_i32_1 = arith.constant 0 : i32
    return %c0_i32, %c0_i32_0 : i32, i32
  }
  func.func @transform_2(%arg0: i32) -> (i32, i32) {
    %c0_i32 = arith.constant 0 : i32
    %c0_i32_0 = arith.constant 0 : i32
    %c0_i32_1 = arith.constant 0 : i32
    return %c0_i32, %c0_i32_0 : i32, i32
  }
  func.func @transform_3(%arg0: i32) -> (i32, i32, i32) {
    %c0_i32 = arith.constant 0 : i32
    %c0_i32_0 = arith.constant 0 : i32
    %c0_i32_1 = arith.constant 0 : i32
    return %arg0, %c0_i32, %c0_i32_0 : i32, i32, i32
  }
}

module attributes {stable_mosaic.version = 11 : i64} {
  func.func @_conv_bn_relu_kernel(%arg0: i32, %arg1: memref<1x72x400xbf16, #tpu.memory_space<vmem>>, %arg2: memref<8x72xbf16, #tpu.memory_space<vmem>>, %arg3: memref<8x1xf32, #tpu.memory_space<vmem>>, %arg4: memref<1x8x400xf32, #tpu.memory_space<vmem>>) attributes {dimension_semantics = [#tpu.dimension_semantics<parallel>], iteration_bounds = array<i64: 2>, scalar_prefetch = 0 : i64, scratch_operands = 0 : i64, tpu.core_type = #tpu.core_type<tc>, window_params = [{transform_indices = @transform_0, window_bounds = array<i64: 1, 72, 400>}, {pipeline_mode = #tpu.pipeline_mode<synchronous>, transform_indices = @transform_1, window_bounds = array<i64: 8, 72>}, {pipeline_mode = #tpu.pipeline_mode<synchronous>, transform_indices = @transform_2, window_bounds = array<i64: 8, 1>}, {transform_indices = @transform_3, window_bounds = array<i64: 1, 8, 400>}]} {
    %c0 = arith.constant 0 : index
    %c0_0 = arith.constant 0 : index
    %0 = vector.load %arg2[%c0, %c0_0] : memref<8x72xbf16, #tpu.memory_space<vmem>>, vector<8x72xbf16>
    %c0_1 = arith.constant 0 : index
    %c0_2 = arith.constant 0 : index
    %c0_3 = arith.constant 0 : index
    %1 = vector.load %arg1[%c0_1, %c0_2, %c0_3] : memref<1x72x400xbf16, #tpu.memory_space<vmem>>, vector<1x72x400xbf16>
    %2 = vector.shape_cast %1 : vector<1x72x400xbf16> to vector<72x400xbf16>
    %cst = arith.constant dense<0.000000e+00> : vector<8x400xf32>
    %3 = tpu.matmul %0, %2, %cst {dimension_numbers = #tpu.dot_dimension_numbers<[1], [0], [0], [1], [0, 0, 1, 1], [], []>} : vector<8x72xbf16>, vector<72x400xbf16>, vector<8x400xf32> -> vector<8x400xf32>
    %c0_4 = arith.constant 0 : index
    %c0_5 = arith.constant 0 : index
    %4 = vector.load %arg3[%c0_4, %c0_5] : memref<8x1xf32, #tpu.memory_space<vmem>>, vector<8x1xf32>
    %5 = vector.broadcast %4 : vector<8x1xf32> to vector<8x400xf32>
    %6 = arith.addf %3, %5 : vector<8x400xf32>
    %cst_6 = arith.constant 0.000000e+00 : f32
    %7 = vector.broadcast %cst_6 : f32 to vector<8x400xf32>
    %8 = arith.maximumf %6, %7 : vector<8x400xf32>
    %c0_7 = arith.constant 0 : index
    %c0_8 = arith.constant 0 : index
    %c0_9 = arith.constant 0 : index
    %9 = vector.load %arg4[%c0_7, %c0_8, %c0_9] : memref<1x8x400xf32, #tpu.memory_space<vmem>>, vector<1x8x400xf32>
    %10 = vector.shape_cast %9 : vector<1x8x400xf32> to vector<8x400xf32>
    %11 = vector.shape_cast %8 : vector<8x400xf32> to vector<1x8x400xf32>
    tpu.vector_store %arg4[%c0_7, %c0_8, %c0_9], %11 {strides = array<i32>} : memref<1x8x400xf32, #tpu.memory_space<vmem>>, vector<1x8x400xf32>,
    return
  }
  func.func @transform_0(%arg0: i32) -> (i32, i32, i32) {
    %c0_i32 = arith.constant 0 : i32
    %c0_i32_0 = arith.constant 0 : i32
    %c0_i32_1 = arith.constant 0 : i32
    return %arg0, %c0_i32, %c0_i32_0 : i32, i32, i32
  }
  func.func @transform_1(%arg0: i32) -> (i32, i32) {
    %c0_i32 = arith.constant 0 : i32
    %c0_i32_0 = arith.constant 0 : i32
    %c0_i32_1 = arith.constant 0 : i32
    return %c0_i32, %c0_i32_0 : i32, i32
  }
  func.func @transform_2(%arg0: i32) -> (i32, i32) {
    %c0_i32 = arith.constant 0 : i32
    %c0_i32_0 = arith.constant 0 : i32
    %c0_i32_1 = arith.constant 0 : i32
    return %c0_i32, %c0_i32_0 : i32, i32
  }
  func.func @transform_3(%arg0: i32) -> (i32, i32, i32) {
    %c0_i32 = arith.constant 0 : i32
    %c0_i32_0 = arith.constant 0 : i32
    %c0_i32_1 = arith.constant 0 : i32
    return %arg0, %c0_i32, %c0_i32_0 : i32, i32, i32
  }
}

module attributes {stable_mosaic.version = 11 : i64} {
  func.func @_conv_bn_relu_kernel(%arg0: i32, %arg1: memref<1x72x100xbf16, #tpu.memory_space<vmem>>, %arg2: memref<8x72xbf16, #tpu.memory_space<vmem>>, %arg3: memref<8x1xf32, #tpu.memory_space<vmem>>, %arg4: memref<1x8x100xf32, #tpu.memory_space<vmem>>) attributes {dimension_semantics = [#tpu.dimension_semantics<parallel>], iteration_bounds = array<i64: 2>, scalar_prefetch = 0 : i64, scratch_operands = 0 : i64, tpu.core_type = #tpu.core_type<tc>, window_params = [{transform_indices = @transform_0, window_bounds = array<i64: 1, 72, 100>}, {pipeline_mode = #tpu.pipeline_mode<synchronous>, transform_indices = @transform_1, window_bounds = array<i64: 8, 72>}, {pipeline_mode = #tpu.pipeline_mode<synchronous>, transform_indices = @transform_2, window_bounds = array<i64: 8, 1>}, {transform_indices = @transform_3, window_bounds = array<i64: 1, 8, 100>}]} {
    %c0 = arith.constant 0 : index
    %c0_0 = arith.constant 0 : index
    %0 = vector.load %arg2[%c0, %c0_0] : memref<8x72xbf16, #tpu.memory_space<vmem>>, vector<8x72xbf16>
    %c0_1 = arith.constant 0 : index
    %c0_2 = arith.constant 0 : index
    %c0_3 = arith.constant 0 : index
    %1 = vector.load %arg1[%c0_1, %c0_2, %c0_3] : memref<1x72x100xbf16, #tpu.memory_space<vmem>>, vector<1x72x100xbf16>
    %2 = vector.shape_cast %1 : vector<1x72x100xbf16> to vector<72x100xbf16>
    %cst = arith.constant dense<0.000000e+00> : vector<8x100xf32>
    %3 = tpu.matmul %0, %2, %cst {dimension_numbers = #tpu.dot_dimension_numbers<[1], [0], [0], [1], [0, 0, 1, 1], [], []>} : vector<8x72xbf16>, vector<72x100xbf16>, vector<8x100xf32> -> vector<8x100xf32>
    %c0_4 = arith.constant 0 : index
    %c0_5 = arith.constant 0 : index
    %4 = vector.load %arg3[%c0_4, %c0_5] : memref<8x1xf32, #tpu.memory_space<vmem>>, vector<8x1xf32>
    %5 = vector.broadcast %4 : vector<8x1xf32> to vector<8x100xf32>
    %6 = arith.addf %3, %5 : vector<8x100xf32>
    %cst_6 = arith.constant 0.000000e+00 : f32
    %7 = vector.broadcast %cst_6 : f32 to vector<8x100xf32>
    %8 = arith.maximumf %6, %7 : vector<8x100xf32>
    %c0_7 = arith.constant 0 : index
    %c0_8 = arith.constant 0 : index
    %c0_9 = arith.constant 0 : index
    %9 = vector.load %arg4[%c0_7, %c0_8, %c0_9] : memref<1x8x100xf32, #tpu.memory_space<vmem>>, vector<1x8x100xf32>
    %10 = vector.shape_cast %9 : vector<1x8x100xf32> to vector<8x100xf32>
    %11 = vector.shape_cast %8 : vector<8x100xf32> to vector<1x8x100xf32>
    tpu.vector_store %arg4[%c0_7, %c0_8, %c0_9], %11 {strides = array<i32>} : memref<1x8x100xf32, #tpu.memory_space<vmem>>, vector<1x8x100xf32>,
    return
  }
  func.func @transform_0(%arg0: i32) -> (i32, i32, i32) {
    %c0_i32 = arith.constant 0 : i32
    %c0_i32_0 = arith.constant 0 : i32
    %c0_i32_1 = arith.constant 0 : i32
    return %arg0, %c0_i32, %c0_i32_0 : i32, i32, i32
  }
  func.func @transform_1(%arg0: i32) -> (i32, i32) {
    %c0_i32 = arith.constant 0 : i32
    %c0_i32_0 = arith.constant 0 : i32
    %c0_i32_1 = arith.constant 0 : i32
    return %c0_i32, %c0_i32_0 : i32, i32
  }
  func.func @transform_2(%arg0: i32) -> (i32, i32) {
    %c0_i32 = arith.constant 0 : i32
    %c0_i32_0 = arith.constant 0 : i32
    %c0_i32_1 = arith.constant 0 : i32
    return %c0_i32, %c0_i32_0 : i32, i32
  }
  func.func @transform_3(%arg0: i32) -> (i32, i32, i32) {
    %c0_i32 = arith.constant 0 : i32
    %c0_i32_0 = arith.constant 0 : i32
    %c0_i32_1 = arith.constant 0 : i32
    return %arg0, %c0_i32, %c0_i32_0 : i32, i32, i32
  }
}

</mosaic_0001>

<bundles_post_ra>
// kernel: convnet_forward.4
= control target key start
LH: loop header
LB: loop body
LE: loop exit
PB: predicated region body
PF: predicated region fallthrough
CT: control target
= control target key end

     0   :  { %s2394_s12 = smov 0   ;;  %s2757_s0 = inlined_call_operand.vmem [shape: bf16[2,27,6400], index: 0, kind: input, shape index: {}]   ;;  %s2758_s1 = inlined_call_operand.vmem [shape: bf16[8,27], index: 1, kind: input, shape index: {}]   ;;  %s2759_s2 = inlined_call_operand.vmem [shape: f32[8,1], index: 2, kind: input, shape index: {}]   ;;  %s2760_s3 = inlined_call_operand.vmem [shape: f32[2,8,6400], index: 3, kind: output, shape index: {}]  }
   0x1 LB: > { %s2067_s13 = sadd.s32 4294967295, %s2370_s12   ;;  %p2071_p0 = scmp.ge.s32.totalorder %s2370_s12, 1  ;;  %s2370_s12 = sphi %s2394_s12, %s13_s12  }
   0x2   : > { %p137_p1 = scmp.lt.s32.totalorder %s2370_s12, 3 }
   0x4   : > { %p138_p2 = pnand %p2071_p0, %p137_p1 }
   0x5   : > { %p161_p3 = scmp.lt.s32.totalorder (!%p138_p2), %s2067_s13, 1  ;;  %v273_v0 = vld [vmem:[%s2759_s2] sm:$0xff] (!%p138_p2)  ;;  %v2372_v1 = vmov (!%p138_p2), 0   ;;  %vm733_vm0 = vcmask (!%p138_p2), 1044480   ;;  %vm734_vm1 = vcmask (!%p138_p2), 1045504   ;;  %v2373_v2 = vmov (!%p138_p2), 65535  }
   0x6   : > { %141 = sbr.rel (%p138_p2) target bundleno = 340 (0x154), region = 32  ;;  %919 = vmatprep.mubr.bf16.mxu0 (!%p138_p2), %v2372_v1  ;;  %960 = vmatprep.mubr.bf16.mxu1 (!%p138_p2), %v2372_v1  ;;  %v735_v3 = vsel (!%p138_p2), %vm733_vm0, 4294967295, %v2373_v2  ;;  %v2429_v13 = vld [vmem:[%s2758_s1] sm:$0xf] (!%p138_p2)  ;;  %vm729_vm2 = vcmask (!%p138_p2), 220160  }
   0x7   : > { %2213 = vset.pattern.permute.xlu0 (!%p138_p2), %v2372_v1  ;;  %v2418_v6 = vsel (!%p138_p2), %vm734_vm1, %v735_v3, 0 }
   0x8   : > { %276 = vperm.xlu0 (!%p138_p2), %2213, %v273_v0  }
   0xd   : > { %s2762_s13 = smov (!%p161_p3, %s2067_s13), 1 }
   0xe   : > { %s2201_s16 = smul.u32 800, %s2762_s13 }
   0xf   : > { %s2202_s22 = smul.u32 400, %s2762_s13 }
  0x10   : > { %s2414_s19 = scalar_lea.vmem %s2757_s0, %s2201_s16 }
  0x11   : > { %v2214_v4 = vld [vmem:[%s2414_s19 + $0x4] ss:$200 sps:$4 sm:$0xff]   ;;  %v2216_v5 = vld [vmem:[%s2414_s19] ss:$200 sps:$4 sm:$0xff]   ;;  %v2223_v14 = vld [vmem:[%s2414_s19 + $0x10] ss:$200 sps:$4 sm:$0xff]   ;;  %s2653_s25 = scalar_lea.vmem %s2760_s3, %s2202_s22 }
  0x12   : > { %887 = vmatprep.subr.bf16.mxu0 %v2214_v4  ;;  %v2217_v7 = vld [vmem:[%s2414_s19 + $0x194] ss:$200 sps:$4 sm:$0x3f]   ;;  %v2219_v8 = vld [vmem:[%s2414_s19 + $0x190] ss:$200 sps:$4 sm:$0x3f]  }
  0x13   : > { %888 = vmatpush1.bf16.msra.mxu0 %v2216_v5  ;;  %v2220_v9 = vld [vmem:[%s2414_s19 + $0xc] ss:$200 sps:$4 sm:$0xff]   ;;  %v741_v10 = vand.u32 %v2217_v7, %v2418_v6  ;;  %v738_v11 = vand.u32 %v2219_v8, %v2418_v6  ;;  %v2222_v12 = vld [vmem:[%s2414_s19 + $0x8] ss:$200 sps:$4 sm:$0xff]   ;;  %v2234_v22 = vld [vmem:[%s2414_s19 + $0x1c] ss:$200 sps:$4 sm:$0xff]  }
  0x14   : > { %928 = vmatprep.subr.bf16.mxu1 %v2220_v9  ;;  %v2225_v15 = vld [vmem:[%s2414_s19 + $0x14] ss:$200 sps:$4 sm:$0xff]   ;;  %v2228_v17 = vld [vmem:[%s2414_s19 + $0x198] ss:$200 sps:$4 sm:$0x3f]  }
  0x15   : > { %889 = vmatprep.subr.bf16.mxu0 %v741_v10  ;;  %929 = vmatpush1.bf16.msra.mxu1 %v2222_v12  ;;  %v2226_v16 = vld [vmem:[%s2414_s19 + $0x19c] ss:$200 sps:$4 sm:$0x3f]   ;;  %v2229_v19 = vld [vmem:[%s2414_s19 + $0x1a0] ss:$200 sps:$4 sm:$0x3f]   ;;  %v744_v21 = vand.u32 %v2228_v17, %v2418_v6 }
  0x16   : > { %v747_v18 = vand.u32 %v2226_v16, %v2418_v6  ;;  %v2231_v20 = vld [vmem:[%s2414_s19 + $0x1a4] ss:$200 sps:$4 sm:$0x3f]   ;;  %v2232_v24 = vld [vmem:[%s2414_s19 + $0x18] ss:$200 sps:$4 sm:$0xff]   ;;  %v750_v25 = vand.u32 %v2229_v19, %v2418_v6 }
  0x17   : > { %890 = vmatpush1.bf16.msra.mxu0 %v738_v11  ;;  %v753_v23 = vand.u32 %v2231_v20, %v2418_v6  ;;  %v2237_v26 = vld [vmem:[%s2414_s19 + $0x24] ss:$200 sps:$4 sm:$0xff]   ;;  %v2238_v27 = vld [vmem:[%s2414_s19 + $0x1a8] ss:$200 sps:$4 sm:$0x3f]  }
  0x18   : > { %969 = vmatprep.subr.bf16.mxu0 %v2225_v15  ;;  %930 = vmatprep.subr.bf16.mxu1 %v747_v18  ;;  %v2240_v28 = vld [vmem:[%s2414_s19 + $0x1ac] ss:$200 sps:$4 sm:$0x3f]   ;;  %v2235_v31 = vld [vmem:[%s2414_s19 + $0x20] ss:$200 sps:$4 sm:$0xff]   ;;  %v756_v32 = vand.u32 %v2238_v27, %v2418_v6 }
  0x19   : > { %931 = vmatpush1.bf16.msra.mxu1 %v744_v21  ;;  %v759_v29 = vand.u32 %v2240_v28, %v2418_v6  ;;  %v2243_v30 = vld [vmem:[%s2414_s19 + $0x1b4] ss:$200 sps:$4 sm:$0x3f]   ;;  %v2241_v33 = vld [vmem:[%s2414_s19 + $0x1b0] ss:$200 sps:$4 sm:$0x3f]  }
  0x1a   : > { %2174 = vmatmul.mubr.msk.bf16.vlgmr.msra.gmra.mrb[0].mxu0 %vm729_vm2, %v2429_v13  ;;  %1010 = vmatprep.subr.bf16.mxu1 %v2234_v22  ;;  %v765_v34 = vand.u32 %v2243_v30, %v2418_v6  ;;  %v2246_v35 = vld [vmem:[%s2414_s19 + $0x2c] ss:$200 sps:$4 sm:$0xff]   ;;  %v2244_v36 = vld [vmem:[%s2414_s19 + $0x28] ss:$200 sps:$4 sm:$0xff]   ;;  %v762_v38 = vand.u32 %v2241_v33, %v2418_v6  ;;  %v2258_v46 = vld [vmem:[%s2414_s19 + $0x3c] ss:$200 sps:$4 sm:$0xff]  }
  0x1b   : > { %970 = vmatpush1.bf16.msra.mxu0 %v2223_v14  ;;  %1001 = vmatprep.mubr.bf16.mxu0 %v2372_v1  ;;  %v2252_v37 = vld [vmem:[%s2414_s19 + $0x1bc] ss:$200 sps:$4 sm:$0x3f]   ;;  %v2250_v40 = vld [vmem:[%s2414_s19 + $0x1b8] ss:$200 sps:$4 sm:$0x3f]  }
  0x1c   : > { %971 = vmatprep.subr.bf16.mxu0 %v753_v23  ;;  %2175 = vmatmul.mubr.msk.bf16.vlgmr.msra.gmra.mrb[0].mxu1 %vm729_vm2, %v2429_v13  ;;  %v2249_v39 = vld [vmem:[%s2414_s19 + $0x34] ss:$200 sps:$4 sm:$0xff]   ;;  %v771_v41 = vand.u32 %v2252_v37, %v2418_v6  ;;  %v2255_v42 = vld [vmem:[%s2414_s19 + $0x1c4] ss:$200 sps:$4 sm:$0x3f]   ;;  %v768_v45 = vand.u32 %v2250_v40, %v2418_v6 }
  0x1d   : > { %1011 = vmatpush1.bf16.msra.mxu1 %v2232_v24  ;;  %1042 = vmatprep.mubr.bf16.mxu1 %v2372_v1  ;;  %v2247_v43 = vld [vmem:[%s2414_s19 + $0x30] ss:$200 sps:$4 sm:$0xff]   ;;  %v2253_v44 = vld [vmem:[%s2414_s19 + $0x1c0] ss:$200 sps:$4 sm:$0x3f]   ;;  %v777_v47 = vand.u32 %v2255_v42, %v2418_v6 }
  0x1e   : > { %1012 = vmatprep.subr.bf16.mxu1 %v759_v29  ;;  %v2264_v48 = vld [vmem:[%s2414_s19 + $0x1cc] ss:$200 sps:$4 sm:$0x3f]   ;;  %v2256_v49 = vld [vmem:[%s2414_s19 + $0x38] ss:$200 sps:$4 sm:$0xff]   ;;  %v774_v51 = vand.u32 %v2253_v44, %v2418_v6 }
  0x1f   : > { %972 = vmatpush1.bf16.msra.mxu0 %v750_v25  ;;  %v2261_v50 = vld [vmem:[%s2414_s19 + $0x44] ss:$200 sps:$4 sm:$0xff]   ;;  %v2262_v52 = vld [vmem:[%s2414_s19 + $0x1c8] ss:$200 sps:$4 sm:$0x3f]   ;;  %v783_v53 = vand.u32 %v2264_v48, %v2418_v6 }
  0x20   : > { %1051 = vmatprep.subr.bf16.mxu0 %v2237_v26  ;;  %v2267_v54 = vld [vmem:[%s2414_s19 + $0x1d4] ss:$200 sps:$4 sm:$0x3f]   ;;  %v2259_v55 = vld [vmem:[%s2414_s19 + $0x40] ss:$200 sps:$4 sm:$0xff]   ;;  %v780_v56 = vand.u32 %v2262_v52, %v2418_v6 }
  0x21   : > { %1013 = vmatpush1.bf16.msra.mxu1 %v756_v32  ;;  %v2265_v57 = vld [vmem:[%s2414_s19 + $0x1d0] ss:$200 sps:$4 sm:$0x3f]   ;;  %v789_v58 = vand.u32 %v2267_v54, %v2418_v6  ;;  %v2270_v59 = vld [vmem:[%s2414_s19 + $0x4c] ss:$200 sps:$4 sm:$0xff]  }
  0x22   : > { %2176 = vmatmul.mubr.msk.bf16.vlgmr.msra.gmra.mrb[4].mxu0 %vm729_vm2, %v2429_v13  ;;  %1092 = vmatprep.subr.bf16.mxu1 %v2246_v35  ;;  %v2276_v60 = vld [vmem:[%s2414_s19 + $0x1dc] ss:$200 sps:$4 sm:$0x3f]   ;;  %v2268_v61 = vld [vmem:[%s2414_s19 + $0x48] ss:$200 sps:$4 sm:$0xff]   ;;  %v786_v62 = vand.u32 %v2265_v57, %v2418_v6 }
  0x23   : > { %1052 = vmatpush1.bf16.msra.mxu0 %v2235_v31  ;;  %1083 = vmatprep.mubr.bf16.mxu0 %v2372_v1  ;;  %v2274_v63 = vld [vmem:[%s2414_s19 + $0x1d8] ss:$200 sps:$4 sm:$0x3f]   ;;  %v2273_v0 = vld [vmem:[%s2414_s19 + $0x54] ss:$200 sps:$4 sm:$0xff]   ;;  %v795_v2 = vand.u32 %v2276_v60, %v2418_v6 }
  0x24   : > { %1053 = vmatprep.subr.bf16.mxu0 %v765_v34  ;;  %2177 = vmatmul.mubr.msk.bf16.vlgmr.msra.gmra.mrb[4].mxu1 %vm729_vm2, %v2429_v13  ;;  %v2279_v3 = vld [vmem:[%s2414_s19 + $0x1e4] ss:$200 sps:$4 sm:$0x3f]   ;;  %v2271_v4 = vld [vmem:[%s2414_s19 + $0x50] ss:$200 sps:$4 sm:$0xff]   ;;  %v792_v5 = vand.u32 %v2274_v63, %v2418_v6 }
  0x25   : > { %1093 = vmatpush1.bf16.msra.mxu1 %v2244_v36  ;;  %1124 = vmatprep.mubr.bf16.mxu1 %v2372_v1  ;;  %v2277_v7 = vld [vmem:[%s2414_s19 + $0x1e0] ss:$200 sps:$4 sm:$0x3f]   ;;  %v2282_v8 = vld [vmem:[%s2414_s19 + $0x5c] ss:$200 sps:$4 sm:$0xff]   ;;  %v801_v9 = vand.u32 %v2279_v3, %v2418_v6 }
  0x26   : > { %1094 = vmatprep.subr.bf16.mxu1 %v771_v41  ;;  %v2288_v10 = vld [vmem:[%s2414_s19 + $0x1ec] ss:$200 sps:$4 sm:$0x3f]   ;;  %v2280_v11 = vld [vmem:[%s2414_s19 + $0x58] ss:$200 sps:$4 sm:$0xff]   ;;  %v798_v12 = vand.u32 %v2277_v7, %v2418_v6 }
  0x27   : > { %1054 = vmatpush1.bf16.msra.mxu0 %v762_v38  ;;  %v2285_v14 = vld [vmem:[%s2414_s19 + $0x64] ss:$200 sps:$4 sm:$0xff]   ;;  %v2286_v15 = vld [vmem:[%s2414_s19 + $0x1e8] ss:$200 sps:$4 sm:$0x3f]   ;;  %v807_v16 = vand.u32 %v2288_v10, %v2418_v6 }
  0x28   : > { %1133 = vmatprep.subr.bf16.mxu0 %v2249_v39  ;;  %v2291_v17 = vld [vmem:[%s2414_s19 + $0x1f4] ss:$200 sps:$4 sm:$0x3f]   ;;  %v2283_v18 = vld [vmem:[%s2414_s19 + $0x60] ss:$200 sps:$4 sm:$0xff]   ;;  %v804_v20 = vand.u32 %v2286_v15, %v2418_v6 }
  0x29   : > { %1095 = vmatpush1.bf16.msra.mxu1 %v768_v45  ;;  %v2289_v19 = vld [vmem:[%s2414_s19 + $0x1f0] ss:$200 sps:$4 sm:$0x3f]   ;;  %v2294_v21 = vld [vmem:[%s2414_s19 + $0x6c] ss:$200 sps:$4 sm:$0xff]   ;;  %v813_v22 = vand.u32 %v2291_v17, %v2418_v6 }
  0x2a   : > { %2178 = vmatmul.mubr.msk.bf16.vlgmr.msra.gmra.mrb[8].mxu0 %vm729_vm2, %v2429_v13  ;;  %1174 = vmatprep.subr.bf16.mxu1 %v2258_v46  ;;  %v2300_v23 = vld [vmem:[%s2414_s19 + $0x1fc] ss:$200 sps:$4 sm:$0x3f]   ;;  %v2292_v24 = vld [vmem:[%s2414_s19 + $0x68] ss:$200 sps:$4 sm:$0xff]   ;;  %v810_v26 = vand.u32 %v2289_v19, %v2418_v6 }
  0x2b   : > { %1134 = vmatpush1.bf16.msra.mxu0 %v2247_v43  ;;  %1165 = vmatprep.mubr.bf16.mxu0 %v2372_v1  ;;  %v2297_v25 = vld [vmem:[%s2414_s19 + $0x74] ss:$200 sps:$4 sm:$0xff]   ;;  %v2298_v27 = vld [vmem:[%s2414_s19 + $0x1f8] ss:$200 sps:$4 sm:$0x3f]   ;;  %v819_v28 = vand.u32 %v2300_v23, %v2418_v6 }
  0x2c   : > { %1135 = vmatprep.subr.bf16.mxu0 %v777_v47  ;;  %2179 = vmatmul.mubr.msk.bf16.vlgmr.msra.gmra.mrb[8].mxu1 %vm729_vm2, %v2429_v13  ;;  %v2303_v29 = vld [vmem:[%s2414_s19 + $0x204] ss:$200 sps:$4 sm:$0x3f]   ;;  %v2295_v30 = vld [vmem:[%s2414_s19 + $0x70] ss:$200 sps:$4 sm:$0xff]   ;;  %v816_v31 = vand.u32 %v2298_v27, %v2418_v6 }
  0x2d   : > { %1175 = vmatpush1.bf16.msra.mxu1 %v2256_v49  ;;  %1206 = vmatprep.mubr.bf16.mxu1 %v2372_v1  ;;  %v2301_v32 = vld [vmem:[%s2414_s19 + $0x200] ss:$200 sps:$4 sm:$0x3f]   ;;  %v825_v33 = vand.u32 %v2303_v29, %v2418_v6  ;;  %v2306_v34 = vld [vmem:[%s2414_s19 + $0x7c] ss:$200 sps:$4 sm:$0xff]  }
  0x2e   : > { %1176 = vmatprep.subr.bf16.mxu1 %v783_v53  ;;  %v2312_v35 = vld [vmem:[%s2414_s19 + $0x20c] ss:$200 sps:$4 sm:$0x3f]   ;;  %v822_v36 = vand.u32 %v2301_v32, %v2418_v6  ;;  %v2304_v37 = vld [vmem:[%s2414_s19 + $0x78] ss:$200 sps:$4 sm:$0xff]  }
  0x2f   : > { %1136 = vmatpush1.bf16.msra.mxu0 %v774_v51  ;;  %v2310_v38 = vld [vmem:[%s2414_s19 + $0x208] ss:$200 sps:$4 sm:$0x3f]   ;;  %v2309_v39 = vld [vmem:[%s2414_s19 + $0x84] ss:$200 sps:$4 sm:$0xff]   ;;  %v831_v40 = vand.u32 %v2312_v35, %v2418_v6 }
  0x30   : > { %1215 = vmatprep.subr.bf16.mxu0 %v2261_v50  ;;  %v2315_v41 = vld [vmem:[%s2414_s19 + $0x214] ss:$200 sps:$4 sm:$0x3f]   ;;  %v2307_v42 = vld [vmem:[%s2414_s19 + $0x80] ss:$200 sps:$4 sm:$0xff]   ;;  %v828_v43 = vand.u32 %v2310_v38, %v2418_v6 }
  0x31   : > { %1177 = vmatpush1.bf16.msra.mxu1 %v780_v56  ;;  %v2313_v44 = vld [vmem:[%s2414_s19 + $0x210] ss:$200 sps:$4 sm:$0x3f]   ;;  %v2318_v45 = vld [vmem:[%s2414_s19 + $0x8c] ss:$200 sps:$4 sm:$0xff]   ;;  %v837_v46 = vand.u32 %v2315_v41, %v2418_v6 }
  0x32   : > { %2180 = vmatmul.mubr.msk.bf16.vlgmr.msra.gmra.mrb[12].mxu0 %vm729_vm2, %v2429_v13  ;;  %1256 = vmatprep.subr.bf16.mxu1 %v2270_v59  ;;  %v2324_v47 = vld [vmem:[%s2414_s19 + $0x21c] ss:$200 sps:$4 sm:$0x3f]   ;;  %v2316_v48 = vld [vmem:[%s2414_s19 + $0x88] ss:$200 sps:$4 sm:$0xff]   ;;  %v834_v49 = vand.u32 %v2313_v44, %v2418_v6 }
  0x33   : > { %1216 = vmatpush1.bf16.msra.mxu0 %v2259_v55  ;;  %1247 = vmatprep.mubr.bf16.mxu0 %v2372_v1  ;;  %v2321_v50 = vld [vmem:[%s2414_s19 + $0x94] ss:$200 sps:$4 sm:$0xff]   ;;  %v2322_v51 = vld [vmem:[%s2414_s19 + $0x218] ss:$200 sps:$4 sm:$0x3f]   ;;  %v843_v52 = vand.u32 %v2324_v47, %v2418_v6 }
  0x34   : > { %1217 = vmatprep.subr.bf16.mxu0 %v789_v58  ;;  %2181 = vmatmul.mubr.msk.bf16.vlgmr.msra.gmra.mrb[12].mxu1 %vm729_vm2, %v2429_v13  ;;  %v2327_v53 = vld [vmem:[%s2414_s19 + $0x224] ss:$200 sps:$4 sm:$0x3f]   ;;  %v2319_v54 = vld [vmem:[%s2414_s19 + $0x90] ss:$200 sps:$4 sm:$0xff]   ;;  %v840_v55 = vand.u32 %v2322_v51, %v2418_v6 }
  0x35   : > { %1257 = vmatpush1.bf16.msra.mxu1 %v2268_v61  ;;  %1288 = vmatprep.mubr.bf16.mxu1 %v2372_v1  ;;  %v2325_v56 = vld [vmem:[%s2414_s19 + $0x220] ss:$200 sps:$4 sm:$0x3f]   ;;  %v849_v57 = vand.u32 %v2327_v53, %v2418_v6  ;;  %v2330_v58 = vld [vmem:[%s2414_s19 + $0x9c] ss:$200 sps:$4 sm:$0xff]  }
  0x36   : > { %1258 = vmatprep.subr.bf16.mxu1 %v795_v2  ;;  %v2336_v59 = vld [vmem:[%s2414_s19 + $0x22c] ss:$200 sps:$4 sm:$0x3f]   ;;  %v846_v60 = vand.u32 %v2325_v56, %v2418_v6  ;;  %v2328_v61 = vld [vmem:[%s2414_s19 + $0x98] ss:$200 sps:$4 sm:$0xff]  }
  0x37   : > { %1218 = vmatpush1.bf16.msra.mxu0 %v786_v62  ;;  %v2334_v62 = vld [vmem:[%s2414_s19 + $0x228] ss:$200 sps:$4 sm:$0x3f]   ;;  %v2333_v63 = vld [vmem:[%s2414_s19 + $0xa4] ss:$200 sps:$4 sm:$0xff]  }
  0x38   : > { %1297 = vmatprep.subr.bf16.mxu0 %v2273_v0  ;;  %v855_v0 = vand.u32 %v2336_v59, %v2418_v6  ;;  %v2339_v2 = vld [vmem:[%s2414_s19 + $0x234] ss:$200 sps:$4 sm:$0x3f]   ;;  %v2331_v3 = vld [vmem:[%s2414_s19 + $0xa0] ss:$200 sps:$4 sm:$0xff]  }
  0x39   : > { %1259 = vmatpush1.bf16.msra.mxu1 %v792_v5  ;;  %v2337_v5 = vld [vmem:[%s2414_s19 + $0x230] ss:$200 sps:$4 sm:$0x3f]   ;;  %v861_v7 = vand.u32 %v2339_v2, %v2418_v6  ;;  %v2349_v19 = vld [vmem:[%s2414_s19 + $0x240] ss:$200 sps:$4 sm:$0x3f]  }
  0x3a   : > { %2182 = vmatmul.mubr.msk.bf16.vlgmr.msra.gmra.mrb[16].mxu0 %vm729_vm2, %v2429_v13  ;;  %1338 = vmatprep.subr.bf16.mxu1 %v2282_v8  ;;  %v2342_v8 = vld [vmem:[%s2414_s19 + $0xac] ss:$200 sps:$4 sm:$0xff]   ;;  %v858_v10 = vand.u32 %v2337_v5, %v2418_v6  ;;  %v2343_v17 = vld [vmem:[%s2414_s19 + $0xb0] ss:$200 sps:$4 sm:$0xff]   ;;  %v870_v23 = vand.u32 %v2349_v19, %v2418_v6  ;;  %v2355_v29 = vld [vmem:[%s2414_s19 + $0xc0] ss:$200 sps:$4 sm:$0xff]  }
  0x3b   : > { %1298 = vmatpush1.bf16.msra.mxu0 %v2271_v4  ;;  %1329 = vmatprep.mubr.bf16.mxu0 %v2372_v1  ;;  %v852_v4 = vand.u32 %v2334_v62, %v2418_v6 }
  0x3c   : > { %1299 = vmatprep.subr.bf16.mxu0 %v801_v9  ;;  %2183 = vmatmul.mubr.msk.bf16.vlgmr.msra.gmra.mrb[16].mxu1 %vm729_vm2, %v2429_v13  ;;  %v2348_v9 = vld [vmem:[%s2414_s19 + $0x23c] ss:$200 sps:$4 sm:$0x3f]  }
  0x3d   : > { %1339 = vmatpush1.bf16.msra.mxu1 %v2280_v11  ;;  %1370 = vmatprep.mubr.bf16.mxu1 %v2372_v1  ;;  %v2340_v11 = vld [vmem:[%s2414_s19 + $0xa8] ss:$200 sps:$4 sm:$0xff]   ;;  %v867_v15 = vand.u32 %v2348_v9, %v2418_v6 }
  0x3e   : > { %1340 = vmatprep.subr.bf16.mxu1 %v807_v16  ;;  %v2351_v16 = vld [vmem:[%s2414_s19 + $0x244] ss:$200 sps:$4 sm:$0x3f]  }
  0x3f   : > { %1300 = vmatpush1.bf16.msra.mxu0 %v798_v12  ;;  %v2346_v12 = vld [vmem:[%s2414_s19 + $0x238] ss:$200 sps:$4 sm:$0x3f]  }
  0x40   : > { %1379 = vmatprep.subr.bf16.mxu0 %v2285_v14  ;;  %v2345_v14 = vld [vmem:[%s2414_s19 + $0xb4] ss:$200 sps:$4 sm:$0xff]  }
  0x41   : > { %1341 = vmatpush1.bf16.msra.mxu1 %v804_v20  ;;  %v873_v20 = vand.u32 %v2351_v16, %v2418_v6 }
  0x42   : > { %2184 = vmatmul.mubr.msk.bf16.vlgmr.msra.gmra.mrb[20].mxu0 %vm729_vm2, %v2429_v13  ;;  %1420 = vmatprep.subr.bf16.mxu1 %v2294_v21  ;;  %v2354_v21 = vld [vmem:[%s2414_s19 + $0xbc] ss:$200 sps:$4 sm:$0xff]  }
  0x43   : > { %1380 = vmatpush1.bf16.msra.mxu0 %v2283_v18  ;;  %1411 = vmatprep.mubr.bf16.mxu0 %v2372_v1  ;;  %v864_v18 = vand.u32 %v2346_v12, %v2418_v6 }
  0x44   : > { %1381 = vmatprep.subr.bf16.mxu0 %v813_v22  ;;  %2185 = vmatmul.mubr.msk.bf16.vlgmr.msra.gmra.mrb[20].mxu1 %vm729_vm2, %v2429_v13  ;;  %v2360_v22 = vld [vmem:[%s2414_s19 + $0x24c] ss:$200 sps:$4 sm:$0x3f]  }
  0x45   : > { %1421 = vmatpush1.bf16.msra.mxu1 %v2292_v24  ;;  %1452 = vmatprep.mubr.bf16.mxu1 %v2372_v1  ;;  %v2352_v24 = vld [vmem:[%s2414_s19 + $0xb8] ss:$200 sps:$4 sm:$0xff]   ;;  %v879_v27 = vand.u32 %v2360_v22, %v2418_v6 }
  0x46   : > { %1422 = vmatprep.subr.bf16.mxu1 %v819_v28  ;;  %v2363_v28 = vld [vmem:[%s2414_s19 + $0x254] ss:$200 sps:$4 sm:$0x3f]  }
  0x47   : > { %1382 = vmatpush1.bf16.msra.mxu0 %v810_v26  ;;  %v2357_v26 = vld [vmem:[%s2414_s19 + $0xc4] ss:$200 sps:$4 sm:$0xff]   ;;  %v885_v32 = vand.u32 %v2363_v28, %v2418_v6 }
  0x48   : > { %1461 = vmatprep.subr.bf16.mxu0 %v2297_v25  ;;  %v2358_v25 = vld [vmem:[%s2414_s19 + $0x248] ss:$200 sps:$4 sm:$0x3f]  }
  0x49   : > { %1423 = vmatpush1.bf16.msra.mxu1 %v816_v31  ;;  %v2361_v31 = vld [vmem:[%s2414_s19 + $0x250] ss:$200 sps:$4 sm:$0x3f]  }
  0x4a   : > { %2186 = vmatmul.mubr.msk.bf16.vlgmr.msra.gmra.mrb[24].mxu0 %vm729_vm2, %v2429_v13  ;;  %1502 = vmatprep.subr.bf16.mxu1 %v2306_v34 }
  0x4b   : > { %1462 = vmatpush1.bf16.msra.mxu0 %v2295_v30  ;;  %1493 = vmatprep.mubr.bf16.mxu0 %v2372_v1  ;;  %v876_v30 = vand.u32 %v2358_v25, %v2418_v6 }
  0x4c   : > { %1463 = vmatprep.subr.bf16.mxu0 %v825_v33  ;;  %2187 = vmatmul.mubr.msk.bf16.vlgmr.msra.gmra.mrb[24].mxu1 %vm729_vm2, %v2429_v13  ;;  %v882_v33 = vand.u32 %v2361_v31, %v2418_v6 }
  0x4d   : > { %1503 = vmatpush1.bf16.msra.mxu1 %v2304_v37  ;;  %1534 = vmatprep.mubr.bf16.mxu1 %v2372_v1 }
  0x4e   : > { %1504 = vmatprep.subr.bf16.mxu1 %v831_v40 }
  0x4f   : > { %1464 = vmatpush1.bf16.msra.mxu0 %v822_v36 }
  0x50   : > { %1543 = vmatprep.subr.bf16.mxu0 %v2309_v39 }
  0x51   : > { %1505 = vmatpush1.bf16.msra.mxu1 %v828_v43 }
  0x52   : > { %2188 = vmatmul.mubr.msk.bf16.vlgmr.msra.gmra.mrb[28].mxu0 %vm729_vm2, %v2429_v13  ;;  %1584 = vmatprep.subr.bf16.mxu1 %v2318_v45 }
  0x53   : > { %1544 = vmatpush1.bf16.msra.mxu0 %v2307_v42  ;;  %1575 = vmatprep.mubr.bf16.mxu0 %v2372_v1 }
  0x54   : > { %1545 = vmatprep.subr.bf16.mxu0 %v837_v46  ;;  %2189 = vmatmul.mubr.msk.bf16.vlgmr.msra.gmra.mrb[28].mxu1 %vm729_vm2, %v2429_v13 }
  0x55   : > { %1585 = vmatpush1.bf16.msra.mxu1 %v2316_v48  ;;  %1616 = vmatprep.mubr.bf16.mxu1 %v2372_v1 }
  0x56   : > { %1586 = vmatprep.subr.bf16.mxu1 %v843_v52 }
  0x57   : > { %1546 = vmatpush1.bf16.msra.mxu0 %v834_v49 }
  0x58   : > { %1625 = vmatprep.subr.bf16.mxu0 %v2321_v50 }
  0x59   : > { %1587 = vmatpush1.bf16.msra.mxu1 %v840_v55 }
  0x5a   : > { %2190 = vmatmul.mubr.msk.bf16.vlgmr.msra.gmra.mrb[32].mxu0 %vm729_vm2, %v2429_v13  ;;  %1666 = vmatprep.subr.bf16.mxu1 %v2330_v58 }
  0x5b   : > { %1626 = vmatpush1.bf16.msra.mxu0 %v2319_v54  ;;  %1657 = vmatprep.mubr.bf16.mxu0 %v2372_v1 }
  0x5c   : > { %1627 = vmatprep.subr.bf16.mxu0 %v849_v57  ;;  %2191 = vmatmul.mubr.msk.bf16.vlgmr.msra.gmra.mrb[32].mxu1 %vm729_vm2, %v2429_v13 }
  0x5d   : > { %1667 = vmatpush1.bf16.msra.mxu1 %v2328_v61  ;;  %1698 = vmatprep.mubr.bf16.mxu1 %v2372_v1 }
  0x5e   : > { %1668 = vmatprep.subr.bf16.mxu1 %v855_v0 }
  0x5f   : > { %1628 = vmatpush1.bf16.msra.mxu0 %v846_v60 }
  0x60   : > { %1707 = vmatprep.subr.bf16.mxu0 %v2333_v63 }
  0x61   : > { %1669 = vmatpush1.bf16.msra.mxu1 %v852_v4 }
  0x62   : > { %2192 = vmatmul.mubr.msk.bf16.vlgmr.msra.gmra.mrb[36].mxu0 %vm729_vm2, %v2429_v13  ;;  %1748 = vmatprep.subr.bf16.mxu1 %v2342_v8 }
  0x63   : > { %1708 = vmatpush1.bf16.msra.mxu0 %v2331_v3  ;;  %1739 = vmatprep.mubr.bf16.mxu0 %v2372_v1 }
  0x64   : > { %1709 = vmatprep.subr.bf16.mxu0 %v861_v7  ;;  %2193 = vmatmul.mubr.msk.bf16.vlgmr.msra.gmra.mrb[36].mxu1 %vm729_vm2, %v2429_v13 }
  0x65   : > { %1749 = vmatpush1.bf16.msra.mxu1 %v2340_v11  ;;  %1780 = vmatprep.mubr.bf16.mxu1 %v2372_v1 }
  0x66   : > { %1750 = vmatprep.subr.bf16.mxu1 %v867_v15 }
  0x67   : > { %1710 = vmatpush1.bf16.msra.mxu0 %v858_v10 }
  0x68   : > { %1789 = vmatprep.subr.bf16.mxu0 %v2345_v14 }
  0x69   : > { %1751 = vmatpush1.bf16.msra.mxu1 %v864_v18 }
  0x6a   : > { %2194 = vmatmul.mubr.msk.bf16.vlgmr.msra.gmra.mrb[40].mxu0 %vm729_vm2, %v2429_v13  ;;  %1830 = vmatprep.subr.bf16.mxu1 %v2354_v21 }
  0x6b   : > { %1790 = vmatpush1.bf16.msra.mxu0 %v2343_v17  ;;  %1821 = vmatprep.mubr.bf16.mxu0 %v2372_v1 }
  0x6c   : > { %1791 = vmatprep.subr.bf16.mxu0 %v873_v20  ;;  %2195 = vmatmul.mubr.msk.bf16.vlgmr.msra.gmra.mrb[40].mxu1 %vm729_vm2, %v2429_v13 }
  0x6d   : > { %1831 = vmatpush1.bf16.msra.mxu1 %v2352_v24  ;;  %1862 = vmatprep.mubr.bf16.mxu1 %v2372_v1 }
  0x6e   : > { %1832 = vmatprep.subr.bf16.mxu1 %v879_v27 }
  0x6f   : > { %1792 = vmatpush1.bf16.msra.mxu0 %v870_v23 }
  0x70   : > { %1871 = vmatprep.subr.bf16.mxu0 %v2357_v26 }
  0x71   : > { %1833 = vmatpush1.bf16.msra.mxu1 %v876_v30 }
  0x72   : > { %2196 = vmatmul.mubr.msk.bf16.vlgmr.msra.gmra.mrb[44].mxu0 %vm729_vm2, %v2429_v13 }
  0x73   : > { %1872 = vmatpush1.bf16.msra.mxu0 %v2355_v29  ;;  %1903 = vmatprep.mubr.bf16.mxu0 %v2372_v1 }
  0x74   : > { %1873 = vmatprep.subr.bf16.mxu0 %v885_v32  ;;  %2197 = vmatmul.mubr.msk.bf16.vlgmr.msra.gmra.mrb[44].mxu1 %vm729_vm2, %v2429_v13 }
  0x77   : > { %1874 = vmatpush1.bf16.msra.mxu0 %v882_v33 }
  0x7a   : > { %2198 = vmatmul.mubr.msk.bf16.vlgmr.msra.gmra.mrb[48].mxu0 %vm729_vm2, %v2429_v13 }
  0x87   : > { %v2646_v34 = vpop.permute.xlu0 %276 }
  0xed   : > { %v921_v35 = vpop.f32.mrb[0].mxu0 }
  0xee   : > { %v922_v36 = vadd.f32 %v921_v35, %v2646_v34  ;;  %v923_v37 = vpop.f32.mrb[1].mxu0 }
  0xef   : > { %v924_v1 = vadd.f32 %v923_v37, %v2646_v34  ;;  %v925_v6 = vpop.f32.mrb[2].mxu0  ;;  %v962_v40 = vpop.f32.mrb[0].mxu1 }
  0xf0   : > { %v1912_v38 = vmax.f32 %v922_v36, 0.0  ;;  %v926_v13 = vpop.f32.mrb[3].mxu0  ;;  %v963_v41 = vadd.f32 %v962_v40, %v2646_v34  ;;  %v964_v42 = vpop.f32.mrb[1].mxu1 }
  0xf1   : > { %v1913_v39 = vmax.f32 %v924_v1, 0.0  ;;  %v965_v43 = vadd.f32 %v964_v42, %v2646_v34  ;;  %v966_v44 = vpop.f32.mrb[2].mxu1 }
  0xf2   : > { %1962 = vst [vmem:[%s2653_s25] sm:$0xff] %v1912_v38  ;;  %v1914_v45 = vmax.f32 %v963_v41, 0.0  ;;  %v967_v46 = vpop.f32.mrb[3].mxu1 }
  0xf3   : > { %1963 = vst [vmem:[%s2653_s25 + $0x8] sm:$0xff] %v1913_v39  ;;  %v1915_v47 = vmax.f32 %v965_v43, 0.0 }
  0xf4   : > { %1964 = vst [vmem:[%s2653_s25 + $0x10] sm:$0xff] %v1914_v45 }
  0xf5   : > { %v1003_v48 = vpop.f32.mrb[4].mxu0  ;;  %1965 = vst [vmem:[%s2653_s25 + $0x18] sm:$0xff] %v1915_v47 }
  0xf6   : > { %v1004_v49 = vadd.f32 %v1003_v48, %v2646_v34  ;;  %v1005_v50 = vpop.f32.mrb[5].mxu0 }
  0xf7   : > { %v1006_v51 = vadd.f32 %v1005_v50, %v2646_v34  ;;  %v1007_v52 = vpop.f32.mrb[6].mxu0  ;;  %v1044_v56 = vpop.f32.mrb[4].mxu1 }
  0xf8   : > { %v1916_v53 = vmax.f32 %v1004_v49, 0.0  ;;  %v1008_v54 = vpop.f32.mrb[7].mxu0  ;;  %v1045_v57 = vadd.f32 %v1044_v56, %v2646_v34  ;;  %v1046_v58 = vpop.f32.mrb[5].mxu1 }
  0xf9   : > { %v1917_v55 = vmax.f32 %v1006_v51, 0.0  ;;  %v1047_v59 = vadd.f32 %v1046_v58, %v2646_v34  ;;  %v1048_v60 = vpop.f32.mrb[6].mxu1 }
  0xfa   : > { %1966 = vst [vmem:[%s2653_s25 + $0x20] sm:$0xff] %v1916_v53  ;;  %v1918_v61 = vmax.f32 %v1045_v57, 0.0  ;;  %v1049_v62 = vpop.f32.mrb[7].mxu1 }
  0xfb   : > { %1967 = vst [vmem:[%s2653_s25 + $0x28] sm:$0xff] %v1917_v55  ;;  %v1919_v63 = vmax.f32 %v1047_v59, 0.0 }
  0xfc   : > { %1968 = vst [vmem:[%s2653_s25 + $0x30] sm:$0xff] %v1918_v61 }
  0xfd   : > { %v1085_v0 = vpop.f32.mrb[8].mxu0  ;;  %1969 = vst [vmem:[%s2653_s25 + $0x38] sm:$0xff] %v1919_v63 }
  0xfe   : > { %v1086_v2 = vadd.f32 %v1085_v0, %v2646_v34  ;;  %v1087_v3 = vpop.f32.mrb[9].mxu0 }
  0xff   : > { %v1088_v4 = vadd.f32 %v1087_v3, %v2646_v34  ;;  %v1089_v5 = vpop.f32.mrb[10].mxu0  ;;  %v1126_v10 = vpop.f32.mrb[8].mxu1 }
 0x100   : > { %v1920_v7 = vmax.f32 %v1086_v2, 0.0  ;;  %v1090_v8 = vpop.f32.mrb[11].mxu0  ;;  %v1127_v11 = vadd.f32 %v1126_v10, %v2646_v34  ;;  %v1128_v12 = vpop.f32.mrb[9].mxu1 }
 0x101   : > { %v1921_v9 = vmax.f32 %v1088_v4, 0.0  ;;  %v1129_v14 = vadd.f32 %v1128_v12, %v2646_v34  ;;  %v1130_v15 = vpop.f32.mrb[10].mxu1 }
 0x102   : > { %1970 = vst [vmem:[%s2653_s25 + $0x40] sm:$0xff] %v1920_v7  ;;  %v1922_v16 = vmax.f32 %v1127_v11, 0.0  ;;  %v1131_v17 = vpop.f32.mrb[11].mxu1 }
 0x103   : > { %1971 = vst [vmem:[%s2653_s25 + $0x48] sm:$0xff] %v1921_v9  ;;  %v1923_v18 = vmax.f32 %v1129_v14, 0.0 }
 0x104   : > { %1972 = vst [vmem:[%s2653_s25 + $0x50] sm:$0xff] %v1922_v16 }
 0x105   : > { %v1167_v19 = vpop.f32.mrb[12].mxu0  ;;  %1973 = vst [vmem:[%s2653_s25 + $0x58] sm:$0xff] %v1923_v18 }
 0x106   : > { %v1168_v20 = vadd.f32 %v1167_v19, %v2646_v34  ;;  %v1169_v21 = vpop.f32.mrb[13].mxu0 }
 0x107   : > { %v1170_v22 = vadd.f32 %v1169_v21, %v2646_v34  ;;  %v1171_v23 = vpop.f32.mrb[14].mxu0  ;;  %v1208_v27 = vpop.f32.mrb[12].mxu1 }
 0x108   : > { %v1924_v24 = vmax.f32 %v1168_v20, 0.0  ;;  %v1172_v25 = vpop.f32.mrb[15].mxu0  ;;  %v1209_v28 = vadd.f32 %v1208_v27, %v2646_v34  ;;  %v1210_v29 = vpop.f32.mrb[13].mxu1 }
 0x109   : > { %v1925_v26 = vmax.f32 %v1170_v22, 0.0  ;;  %v1211_v30 = vadd.f32 %v1210_v29, %v2646_v34  ;;  %v1212_v31 = vpop.f32.mrb[14].mxu1 }
 0x10a   : > { %1974 = vst [vmem:[%s2653_s25 + $0x60] sm:$0xff] %v1924_v24  ;;  %v1926_v32 = vmax.f32 %v1209_v28, 0.0  ;;  %v1213_v33 = vpop.f32.mrb[15].mxu1 }
 0x10b   : > { %1975 = vst [vmem:[%s2653_s25 + $0x68] sm:$0xff] %v1925_v26  ;;  %v1927_v35 = vmax.f32 %v1211_v30, 0.0 }
 0x10c   : > { %1976 = vst [vmem:[%s2653_s25 + $0x70] sm:$0xff] %v1926_v32 }
 0x10d   : > { %v1249_v36 = vpop.f32.mrb[16].mxu0  ;;  %1977 = vst [vmem:[%s2653_s25 + $0x78] sm:$0xff] %v1927_v35 }
 0x10e   : > { %v1250_v37 = vadd.f32 %v1249_v36, %v2646_v34  ;;  %v1251_v1 = vpop.f32.mrb[17].mxu0 }
 0x10f   : > { %v1252_v6 = vadd.f32 %v1251_v1, %v2646_v34  ;;  %v1253_v38 = vpop.f32.mrb[18].mxu0  ;;  %v1290_v41 = vpop.f32.mrb[16].mxu1 }
 0x110   : > { %v1928_v13 = vmax.f32 %v1250_v37, 0.0  ;;  %v1254_v39 = vpop.f32.mrb[19].mxu0  ;;  %v1291_v42 = vadd.f32 %v1290_v41, %v2646_v34  ;;  %v1292_v43 = vpop.f32.mrb[17].mxu1 }
 0x111   : > { %v1929_v40 = vmax.f32 %v1252_v6, 0.0  ;;  %v1293_v44 = vadd.f32 %v1292_v43, %v2646_v34  ;;  %v1294_v45 = vpop.f32.mrb[18].mxu1 }
 0x112   : > { %1978 = vst [vmem:[%s2653_s25 + $0x80] sm:$0xff] %v1928_v13  ;;  %v1930_v46 = vmax.f32 %v1291_v42, 0.0  ;;  %v1295_v47 = vpop.f32.mrb[19].mxu1 }
 0x113   : > { %1979 = vst [vmem:[%s2653_s25 + $0x88] sm:$0xff] %v1929_v40  ;;  %v1931_v48 = vmax.f32 %v1293_v44, 0.0 }
 0x114   : > { %1980 = vst [vmem:[%s2653_s25 + $0x90] sm:$0xff] %v1930_v46 }
 0x115   : > { %v1331_v49 = vpop.f32.mrb[20].mxu0  ;;  %1981 = vst [vmem:[%s2653_s25 + $0x98] sm:$0xff] %v1931_v48 }
 0x116   : > { %v1332_v50 = vadd.f32 %v1331_v49, %v2646_v34  ;;  %v1333_v51 = vpop.f32.mrb[21].mxu0 }
 0x117   : > { %v1334_v52 = vadd.f32 %v1333_v51, %v2646_v34  ;;  %v1335_v53 = vpop.f32.mrb[22].mxu0  ;;  %v1372_v57 = vpop.f32.mrb[20].mxu1 }
 0x118   : > { %v1932_v54 = vmax.f32 %v1332_v50, 0.0  ;;  %v1336_v55 = vpop.f32.mrb[23].mxu0  ;;  %v1373_v58 = vadd.f32 %v1372_v57, %v2646_v34  ;;  %v1374_v59 = vpop.f32.mrb[21].mxu1 }
 0x119   : > { %v1933_v56 = vmax.f32 %v1334_v52, 0.0  ;;  %v1375_v60 = vadd.f32 %v1374_v59, %v2646_v34  ;;  %v1376_v61 = vpop.f32.mrb[22].mxu1 }
 0x11a   : > { %1982 = vst [vmem:[%s2653_s25 + $0xa0] sm:$0xff] %v1932_v54  ;;  %v1934_v62 = vmax.f32 %v1373_v58, 0.0  ;;  %v1377_v63 = vpop.f32.mrb[23].mxu1 }
 0x11b   : > { %1983 = vst [vmem:[%s2653_s25 + $0xa8] sm:$0xff] %v1933_v56  ;;  %v1935_v0 = vmax.f32 %v1375_v60, 0.0 }
 0x11c   : > { %1984 = vst [vmem:[%s2653_s25 + $0xb0] sm:$0xff] %v1934_v62 }
 0x11d   : > { %v1413_v2 = vpop.f32.mrb[24].mxu0  ;;  %1985 = vst [vmem:[%s2653_s25 + $0xb8] sm:$0xff] %v1935_v0 }
 0x11e   : > { %v1414_v3 = vadd.f32 %v1413_v2, %v2646_v34  ;;  %v1415_v4 = vpop.f32.mrb[25].mxu0 }
 0x11f   : > { %v1416_v5 = vadd.f32 %v1415_v4, %v2646_v34  ;;  %v1417_v7 = vpop.f32.mrb[26].mxu0  ;;  %v1454_v11 = vpop.f32.mrb[24].mxu1 }
 0x120   : > { %v1936_v8 = vmax.f32 %v1414_v3, 0.0  ;;  %v1418_v9 = vpop.f32.mrb[27].mxu0  ;;  %v1455_v12 = vadd.f32 %v1454_v11, %v2646_v34  ;;  %v1456_v14 = vpop.f32.mrb[25].mxu1 }
 0x121   : > { %v1937_v10 = vmax.f32 %v1416_v5, 0.0  ;;  %v1457_v15 = vadd.f32 %v1456_v14, %v2646_v34  ;;  %v1458_v16 = vpop.f32.mrb[26].mxu1 }
 0x122   : > { %1986 = vst [vmem:[%s2653_s25 + $0xc0] sm:$0xff] %v1936_v8  ;;  %v1938_v17 = vmax.f32 %v1455_v12, 0.0  ;;  %v1459_v18 = vpop.f32.mrb[27].mxu1 }
 0x123   : > { %1987 = vst [vmem:[%s2653_s25 + $0xc8] sm:$0xff] %v1937_v10  ;;  %v1939_v19 = vmax.f32 %v1457_v15, 0.0 }
 0x124   : > { %1988 = vst [vmem:[%s2653_s25 + $0xd0] sm:$0xff] %v1938_v17 }
 0x125   : > { %v1495_v20 = vpop.f32.mrb[28].mxu0  ;;  %1989 = vst [vmem:[%s2653_s25 + $0xd8] sm:$0xff] %v1939_v19 }
 0x126   : > { %v1496_v21 = vadd.f32 %v1495_v20, %v2646_v34  ;;  %v1497_v22 = vpop.f32.mrb[29].mxu0 }
 0x127   : > { %v1498_v23 = vadd.f32 %v1497_v22, %v2646_v34  ;;  %v1499_v24 = vpop.f32.mrb[30].mxu0  ;;  %v1536_v28 = vpop.f32.mrb[28].mxu1 }
 0x128   : > { %v1940_v25 = vmax.f32 %v1496_v21, 0.0  ;;  %v1500_v26 = vpop.f32.mrb[31].mxu0  ;;  %v1537_v29 = vadd.f32 %v1536_v28, %v2646_v34  ;;  %v1538_v30 = vpop.f32.mrb[29].mxu1 }
 0x129   : > { %v1941_v27 = vmax.f32 %v1498_v23, 0.0  ;;  %v1539_v31 = vadd.f32 %v1538_v30, %v2646_v34  ;;  %v1540_v32 = vpop.f32.mrb[30].mxu1 }
 0x12a   : > { %1990 = vst [vmem:[%s2653_s25 + $0xe0] sm:$0xff] %v1940_v25  ;;  %v1942_v33 = vmax.f32 %v1537_v29, 0.0  ;;  %v1541_v35 = vpop.f32.mrb[31].mxu1 }
 0x12b   : > { %1991 = vst [vmem:[%s2653_s25 + $0xe8] sm:$0xff] %v1941_v27  ;;  %v1943_v36 = vmax.f32 %v1539_v31, 0.0 }
 0x12c   : > { %1992 = vst [vmem:[%s2653_s25 + $0xf0] sm:$0xff] %v1942_v33 }
 0x12d   : > { %v1577_v37 = vpop.f32.mrb[32].mxu0  ;;  %1993 = vst [vmem:[%s2653_s25 + $0xf8] sm:$0xff] %v1943_v36 }
 0x12e   : > { %v1578_v1 = vadd.f32 %v1577_v37, %v2646_v34  ;;  %v1579_v6 = vpop.f32.mrb[33].mxu0 }
 0x12f   : > { %v1580_v38 = vadd.f32 %v1579_v6, %v2646_v34  ;;  %v1581_v13 = vpop.f32.mrb[34].mxu0  ;;  %v1618_v42 = vpop.f32.mrb[32].mxu1 }
 0x130   : > { %v1944_v39 = vmax.f32 %v1578_v1, 0.0  ;;  %v1582_v40 = vpop.f32.mrb[35].mxu0  ;;  %v1619_v43 = vadd.f32 %v1618_v42, %v2646_v34  ;;  %v1620_v44 = vpop.f32.mrb[33].mxu1 }
 0x131   : > { %v1945_v41 = vmax.f32 %v1580_v38, 0.0  ;;  %v1621_v45 = vadd.f32 %v1620_v44, %v2646_v34  ;;  %v1622_v46 = vpop.f32.mrb[34].mxu1 }
 0x132   : > { %1994 = vst [vmem:[%s2653_s25 + $0x100] sm:$0xff] %v1944_v39  ;;  %v1946_v47 = vmax.f32 %v1619_v43, 0.0  ;;  %v1623_v48 = vpop.f32.mrb[35].mxu1 }
 0x133   : > { %1995 = vst [vmem:[%s2653_s25 + $0x108] sm:$0xff] %v1945_v41  ;;  %v1947_v49 = vmax.f32 %v1621_v45, 0.0 }
 0x134   : > { %1996 = vst [vmem:[%s2653_s25 + $0x110] sm:$0xff] %v1946_v47 }
 0x135   : > { %v1659_v50 = vpop.f32.mrb[36].mxu0  ;;  %1997 = vst [vmem:[%s2653_s25 + $0x118] sm:$0xff] %v1947_v49 }
 0x136   : > { %v1660_v51 = vadd.f32 %v1659_v50, %v2646_v34  ;;  %v1661_v52 = vpop.f32.mrb[37].mxu0 }
 0x137   : > { %v1662_v53 = vadd.f32 %v1661_v52, %v2646_v34  ;;  %v1663_v54 = vpop.f32.mrb[38].mxu0  ;;  %v1700_v58 = vpop.f32.mrb[36].mxu1 }
 0x138   : > { %v1948_v55 = vmax.f32 %v1660_v51, 0.0  ;;  %v1664_v56 = vpop.f32.mrb[39].mxu0  ;;  %v1701_v59 = vadd.f32 %v1700_v58, %v2646_v34  ;;  %v1702_v60 = vpop.f32.mrb[37].mxu1 }
 0x139   : > { %v1949_v57 = vmax.f32 %v1662_v53, 0.0  ;;  %v1703_v61 = vadd.f32 %v1702_v60, %v2646_v34  ;;  %v1704_v62 = vpop.f32.mrb[38].mxu1 }
 0x13a   : > { %1998 = vst [vmem:[%s2653_s25 + $0x120] sm:$0xff] %v1948_v55  ;;  %v1950_v63 = vmax.f32 %v1701_v59, 0.0  ;;  %v1705_v0 = vpop.f32.mrb[39].mxu1 }
 0x13b   : > { %1999 = vst [vmem:[%s2653_s25 + $0x128] sm:$0xff] %v1949_v57  ;;  %v1951_v2 = vmax.f32 %v1703_v61, 0.0 }
 0x13c   : > { %2000 = vst [vmem:[%s2653_s25 + $0x130] sm:$0xff] %v1950_v63 }
 0x13d   : > { %v1741_v3 = vpop.f32.mrb[40].mxu0  ;;  %2001 = vst [vmem:[%s2653_s25 + $0x138] sm:$0xff] %v1951_v2 }
 0x13e   : > { %v1742_v4 = vadd.f32 %v1741_v3, %v2646_v34  ;;  %v1743_v5 = vpop.f32.mrb[41].mxu0 }
 0x13f   : > { %v1744_v7 = vadd.f32 %v1743_v5, %v2646_v34  ;;  %v1745_v8 = vpop.f32.mrb[42].mxu0  ;;  %v1782_v12 = vpop.f32.mrb[40].mxu1 }
 0x140   : > { %v1952_v9 = vmax.f32 %v1742_v4, 0.0  ;;  %v1746_v10 = vpop.f32.mrb[43].mxu0  ;;  %v1783_v14 = vadd.f32 %v1782_v12, %v2646_v34  ;;  %v1784_v15 = vpop.f32.mrb[41].mxu1 }
 0x141   : > { %v1953_v11 = vmax.f32 %v1744_v7, 0.0  ;;  %v1785_v16 = vadd.f32 %v1784_v15, %v2646_v34  ;;  %v1786_v17 = vpop.f32.mrb[42].mxu1 }
 0x142   : > { %2002 = vst [vmem:[%s2653_s25 + $0x140] sm:$0xff] %v1952_v9  ;;  %v1954_v18 = vmax.f32 %v1783_v14, 0.0  ;;  %v1787_v19 = vpop.f32.mrb[43].mxu1 }
 0x143   : > { %2003 = vst [vmem:[%s2653_s25 + $0x148] sm:$0xff] %v1953_v11  ;;  %v1955_v20 = vmax.f32 %v1785_v16, 0.0 }
 0x144   : > { %2004 = vst [vmem:[%s2653_s25 + $0x150] sm:$0xff] %v1954_v18 }
 0x145   : > { %v1823_v21 = vpop.f32.mrb[44].mxu0  ;;  %2005 = vst [vmem:[%s2653_s25 + $0x158] sm:$0xff] %v1955_v20 }
 0x146   : > { %v1824_v22 = vadd.f32 %v1823_v21, %v2646_v34  ;;  %v1825_v23 = vpop.f32.mrb[45].mxu0 }
 0x147   : > { %v1826_v24 = vadd.f32 %v1825_v23, %v2646_v34  ;;  %v1827_v25 = vpop.f32.mrb[46].mxu0  ;;  %v1864_v29 = vpop.f32.mrb[44].mxu1 }
 0x148   : > { %v1956_v26 = vmax.f32 %v1824_v22, 0.0  ;;  %v1828_v27 = vpop.f32.mrb[47].mxu0  ;;  %v1865_v30 = vadd.f32 %v1864_v29, %v2646_v34  ;;  %v1866_v31 = vpop.f32.mrb[45].mxu1 }
 0x149   : > { %v1957_v28 = vmax.f32 %v1826_v24, 0.0  ;;  %v1867_v32 = vadd.f32 %v1866_v31, %v2646_v34  ;;  %v1868_v33 = vpop.f32.mrb[46].mxu1 }
 0x14a   : > { %2006 = vst [vmem:[%s2653_s25 + $0x160] sm:$0xff] %v1956_v26  ;;  %v1958_v35 = vmax.f32 %v1865_v30, 0.0  ;;  %v1869_v36 = vpop.f32.mrb[47].mxu1 }
 0x14b   : > { %2007 = vst [vmem:[%s2653_s25 + $0x168] sm:$0xff] %v1957_v28  ;;  %v1959_v37 = vmax.f32 %v1867_v32, 0.0 }
 0x14c   : > { %2008 = vst [vmem:[%s2653_s25 + $0x170] sm:$0xff] %v1958_v35 }
 0x14d   : > { %v1905_v1 = vpop.f32.mrb[48].mxu0  ;;  %2009 = vst [vmem:[%s2653_s25 + $0x178] sm:$0xff] %v1959_v37 }
 0x14e   : > { %v1906_v6 = vadd.f32 %v1905_v1, %v2646_v34  ;;  %v1907_v38 = vpop.f32.mrb[49].mxu0 }
 0x14f   : > { %v1908_v13 = vadd.f32 %v1907_v38, %v2646_v34  ;;  %v1909_v39 = vpop.f32.mrb[50].mxu0 }
 0x150   : > { %v1960_v40 = vmax.f32 %v1906_v6, 0.0  ;;  %v1910_v41 = vpop.f32.mrb[51].mxu0 }
 0x151   : > { %v1961_v42 = vmax.f32 %v1908_v13, 0.0 }
 0x152   : > { %2010 = vst [vmem:[%s2653_s25 + $0x180] sm:$0xff] %v1960_v40 }
 0x153   : > { %2011 = vst [vmem:[%s2653_s25 + $0x188] sm:$0xff] %v1961_v42 }
 0x154 PF: > { %s13_s12 = sadd.s32 1, %s2370_s12  }
 0x155   : > { %p10_p4 = scmp.ge.s32.totalorder %s13_s12, 4  }
 0x157   :  { %12 = sbr.rel (!%p10_p4) target bundleno = 1 (0x1), region = 62 }

// kernel: convnet_forward.5
= control target key start
LH: loop header
LB: loop body
LE: loop exit
PB: predicated region body
PF: predicated region fallthrough
CT: control target
= control target key end

     0   :  { %s1192_s12 = smov 0   ;;  %s1346_s0 = inlined_call_operand.vmem [shape: bf16[2,72,1600], index: 0, kind: input, shape index: {}]   ;;  %s1347_s1 = inlined_call_operand.vmem [shape: bf16[8,72], index: 1, kind: input, shape index: {}]   ;;  %s1348_s2 = inlined_call_operand.vmem [shape: f32[8,1], index: 2, kind: input, shape index: {}]   ;;  %s1349_s3 = inlined_call_operand.vmem [shape: f32[2,8,1600], index: 3, kind: output, shape index: {}]  }
   0x1 LB: > { %s951_s13 = sadd.s32 4294967295, %s1167_s12   ;;  %p955_p0 = scmp.ge.s32.totalorder %s1167_s12, 1  ;;  %s1167_s12 = sphi %s1192_s12, %s13_s12  }
   0x2   : > { %p137_p1 = scmp.lt.s32.totalorder %s1167_s12, 3 }
   0x4   : > { %p138_p2 = pnand %p955_p0, %p137_p1 }
   0x5   : > { %p161_p3 = scmp.lt.s32.totalorder (!%p138_p2), %s951_s13, 1  ;;  %v1169_v0 = vmov (!%p138_p2), 0   ;;  %v236_v1 = vld [vmem:[%s1348_s2] sm:$0xff] (!%p138_p2)  ;;  %vm543_vm0 = vcmask (!%p138_p2), 1043456   ;;  %vm539_vm1 = vcmask (!%p138_p2), 588800   ;;  %vm1171_vm2 = vmmov (!%p138_p2), 0  }
   0x6   : > { %141 = sbr.rel (%p138_p2) target bundleno = 315 (0x13b), region = 32  ;;  %615 = vmatprep.mubr.bf16.mxu0 (!%p138_p2), %v1169_v0  ;;  %656 = vmatprep.mubr.bf16.mxu1 (!%p138_p2), %v1169_v0  ;;  %v1238_v26 = vld [vmem:[%s1347_s1] sm:$0xf] (!%p138_p2)  ;;  %vm894_vm3 = vcmask (!%p138_p2), 523264  }
   0x7   : > { %1071 = vset.pattern.permute.xlu0 (!%p138_p2), %v1169_v0 }
   0x8   : > { %239 = vperm.xlu0 (!%p138_p2), %1071, %v236_v1  }
   0xd   : > { %s1351_s13 = smov (!%p161_p3, %s951_s13), 1 }
   0xe   : > { %s1058_s16 = smul.u32 468, %s1351_s13 }
   0xf   : > { %s1059_s22 = smul.u32 104, %s1351_s13 }
  0x10   : > { %s1212_s19 = scalar_lea.vmem %s1346_s0, %s1058_s16 }
  0x11   : > { %v1072_v2 = vld [vmem:[%s1212_s19 + $0x4] ss:$52 sps:$4 sm:$0xff]   ;;  %v1074_v3 = vld [vmem:[%s1212_s19] ss:$52 sps:$4 sm:$0xff]   ;;  %v1077_v5 = vld [vmem:[%s1212_s19 + $0x68] ss:$52 sps:$4 sm:$0xff]   ;;  %s1316_s25 = scalar_lea.vmem %s1349_s3, %s1059_s22 }
  0x12   : > { %583 = vmatprep.subr.bf16.mxu0 %v1072_v2  ;;  %v1075_v4 = vld [vmem:[%s1212_s19 + $0x6c] ss:$52 sps:$4 sm:$0xff]   ;;  %v1078_v6 = vld [vmem:[%s1212_s19 + $0xd4] ss:$52 sps:$4 sm:$0xff]   ;;  %v1080_v7 = vld [vmem:[%s1212_s19 + $0xd0] ss:$52 sps:$4 sm:$0xff]  }
  0x13   : > { %584 = vmatpush1.bf16.msra.mxu0 %v1074_v3  ;;  %v1085_v8 = vld [vmem:[%s1212_s19 + $0xc] ss:$52 sps:$4 sm:$0xff]   ;;  %v1088_v9 = vld [vmem:[%s1212_s19 + $0x8] ss:$52 sps:$4 sm:$0xff]   ;;  %v1094_v13 = vld [vmem:[%s1212_s19 + $0x70] ss:$52 sps:$4 sm:$0xff]  }
  0x14   : > { %585 = vmatprep.subr.bf16.mxu0 %v1075_v4  ;;  %v1089_v10 = vld [vmem:[%s1212_s19 + $0x74] ss:$52 sps:$4 sm:$0xff]   ;;  %v1081_v11 = vld [vmem:[%s1212_s19 + $0x13c] ss:$52 sps:$4 sm:$0xff]   ;;  %624 = vmatprep.subr.bf16.mxu1 %v1085_v8  ;;  %v229_v12 = vld [vmem:[%s1212_s19 + $0x1a0] sm:$0xff] }
  0x15   : > { %625 = vmatpush1.bf16.msra.mxu1 %v1088_v9  ;;  %v1095_v14 = vld [vmem:[%s1212_s19 + $0xdc] ss:$52 sps:$4 sm:$0xff]   ;;  %v1083_v15 = vld [vmem:[%s1212_s19 + $0x138] ss:$52 sps:$4 sm:$0xff]   ;;  %v1011_v16 = vcombine.high %v229_v12, %v229_v12  ;;  %v1010_v17 = vcombine.low %v229_v12, %v229_v12  ;;  %v1093_v22 = vld [vmem:[%s1212_s19 + $0x14] ss:$52 sps:$4 sm:$0xff]  }
  0x16   : > { %626 = vmatprep.subr.bf16.mxu1 %v1089_v10  ;;  %v1100_v18 = vld [vmem:[%s1212_s19 + $0xd8] ss:$52 sps:$4 sm:$0xff]   ;;  %v1106_v23 = vld [vmem:[%s1212_s19 + $0x140] ss:$52 sps:$4 sm:$0xff]   ;;  %v1091_v27 = vld [vmem:[%s1212_s19 + $0x10] ss:$52 sps:$4 sm:$0xff]  }
  0x17   : > { %586 = vmatpush1.bf16.msra.mxu0 %v1077_v5  ;;  %v1101_v19 = vld [vmem:[%s1212_s19 + $0x144] ss:$52 sps:$4 sm:$0xff]   ;;  %v230_v20 = vld [vmem:[%s1212_s19 + $0x1a8] sm:$0xff]  ;;  %v545_v21 = vsel %vm543_vm0, %v1010_v17, 0  ;;  %v1099_v28 = vld [vmem:[%s1212_s19 + $0x7c] ss:$52 sps:$4 sm:$0xff]  }
  0x18   : > { %587 = vmatprep.subr.bf16.mxu0 %v1078_v6  ;;  %v1013_v24 = vcombine.high %v230_v20, %v230_v20  ;;  %v1012_v25 = vcombine.low %v230_v20, %v230_v20  ;;  %v1115_v30 = vld [vmem:[%s1212_s19 + $0x1c] ss:$52 sps:$4 sm:$0xff]   ;;  %v1097_v31 = vld [vmem:[%s1212_s19 + $0x78] ss:$52 sps:$4 sm:$0xff]   ;;  %v1103_v35 = vld [vmem:[%s1212_s19 + $0xe0] ss:$52 sps:$4 sm:$0xff]  }
  0x19   : > { %627 = vmatpush1.bf16.msra.mxu1 %v1094_v13  ;;  %v1105_v32 = vld [vmem:[%s1212_s19 + $0xe4] ss:$52 sps:$4 sm:$0xff]   ;;  %v1110_v36 = vld [vmem:[%s1212_s19 + $0x14c] ss:$52 sps:$4 sm:$0xff]   ;;  %v231_v37 = vld [vmem:[%s1212_s19 + $0x1b0] sm:$0xff] }
  0x1a   : > { %628 = vmatprep.subr.bf16.mxu1 %v1095_v14  ;;  %v551_v29 = vsel %vm543_vm0, %v1012_v25, 0  ;;  %v1113_v33 = vld [vmem:[%s1212_s19 + $0x18] ss:$52 sps:$4 sm:$0xff]   ;;  %v1117_v38 = vld [vmem:[%s1212_s19 + $0x80] ss:$52 sps:$4 sm:$0xff]   ;;  %v1015_v41 = vcombine.high %v231_v37, %v231_v37  ;;  %v1014_v42 = vcombine.low %v231_v37, %v231_v37 }
  0x1b   : > { %588 = vmatpush1.bf16.msra.mxu0 %v1080_v7  ;;  %v1119_v34 = vld [vmem:[%s1212_s19 + $0x84] ss:$52 sps:$4 sm:$0xff]   ;;  %v1108_v39 = vld [vmem:[%s1212_s19 + $0x148] ss:$52 sps:$4 sm:$0xff]   ;;  %v1125_v40 = vld [vmem:[%s1212_s19 + $0xec] ss:$52 sps:$4 sm:$0xff]  }
  0x1c   : > { %589 = vmatprep.subr.bf16.mxu0 %v1081_v11  ;;  %v1123_v43 = vld [vmem:[%s1212_s19 + $0xe8] ss:$52 sps:$4 sm:$0xff]   ;;  %v557_v46 = vsel %vm543_vm0, %v1014_v42, 0  ;;  %v1122_v47 = vld [vmem:[%s1212_s19 + $0x24] ss:$52 sps:$4 sm:$0xff]   ;;  %v1170_v11 = vmov 0.0  }
  0x1d   : > { %629 = vmatpush1.bf16.msra.mxu1 %v1100_v18  ;;  %v1131_v44 = vld [vmem:[%s1212_s19 + $0x154] ss:$52 sps:$4 sm:$0xff]   ;;  %v232_v45 = vld [vmem:[%s1212_s19 + $0x1b8] sm:$0xff]  ;;  %v1129_v48 = vld [vmem:[%s1212_s19 + $0x150] ss:$52 sps:$4 sm:$0xff]  }
  0x1e   : > { %630 = vmatprep.subr.bf16.mxu1 %v1101_v19  ;;  %v1017_v49 = vcombine.high %v232_v45, %v232_v45  ;;  %v1016_v50 = vcombine.low %v232_v45, %v232_v45  ;;  %v1120_v51 = vld [vmem:[%s1212_s19 + $0x20] ss:$52 sps:$4 sm:$0xff]   ;;  %v1126_v55 = vld [vmem:[%s1212_s19 + $0x88] ss:$52 sps:$4 sm:$0xff]   ;;  %v1132_v59 = vld [vmem:[%s1212_s19 + $0xf0] ss:$52 sps:$4 sm:$0xff]  }
  0x1f   : > { %590 = vmatpush1.bf16.msra.mxu0 %v1083_v15  ;;  %v1128_v52 = vld [vmem:[%s1212_s19 + $0x8c] ss:$52 sps:$4 sm:$0xff]   ;;  %v1134_v56 = vld [vmem:[%s1212_s19 + $0xf4] ss:$52 sps:$4 sm:$0xff]   ;;  %v1138_v60 = vld [vmem:[%s1212_s19 + $0x15c] ss:$52 sps:$4 sm:$0xff]  }
  0x20   : > { %1023 = vmatprep.subr.msk.bf16.mxu0 %vm543_vm0, %v1011_v16  ;;  %v563_v53 = vsel %vm543_vm0, %v1016_v50, 0  ;;  %v1143_v54 = vld [vmem:[%s1212_s19 + $0x2c] ss:$52 sps:$4 sm:$0xff]   ;;  %v1141_v57 = vld [vmem:[%s1212_s19 + $0x28] ss:$52 sps:$4 sm:$0xff]  }
  0x21   : > { %631 = vmatpush1.bf16.msra.mxu1 %v1106_v23  ;;  %v1147_v58 = vld [vmem:[%s1212_s19 + $0x94] ss:$52 sps:$4 sm:$0xff]   ;;  %v233_v61 = vld [vmem:[%s1212_s19 + $0x1c0] sm:$0xff]  ;;  %v1151_v63 = vld [vmem:[%s1212_s19 + $0xfc] ss:$52 sps:$4 sm:$0xff]  }
  0x22   : > { %1025 = vmatprep.subr.msk.bf16.mxu1 %vm543_vm0, %v1013_v24  ;;  %v1145_v62 = vld [vmem:[%s1212_s19 + $0x90] ss:$52 sps:$4 sm:$0xff]   ;;  %v1136_v1 = vld [vmem:[%s1212_s19 + $0x158] ss:$52 sps:$4 sm:$0xff]   ;;  %v1019_v2 = vcombine.high %v233_v61, %v233_v61  ;;  %v1018_v3 = vcombine.low %v233_v61, %v233_v61  ;;  %v1153_v7 = vld [vmem:[%s1212_s19 + $0x160] ss:$52 sps:$4 sm:$0xff]  }
  0x23   : > { %592 = vmatpush1.bf16.msra.mxu0 %v545_v21  ;;  %v1149_v4 = vld [vmem:[%s1212_s19 + $0xf8] ss:$52 sps:$4 sm:$0xff]   ;;  %v1148_v10 = vld [vmem:[%s1212_s19 + $0x30] ss:$52 sps:$4 sm:$0xff]   ;;  %v1156_v14 = vld [vmem:[%s1212_s19 + $0x100] ss:$52 sps:$4 sm:$0xff]  }
  0x24   : > { %665 = vmatprep.subr.bf16.mxu0 %v1093_v22  ;;  %v1155_v5 = vld [vmem:[%s1212_s19 + $0x164] ss:$52 sps:$4 sm:$0xff]   ;;  %v234_v6 = vld [vmem:[%s1212_s19 + $0x1c8] sm:$0xff]  ;;  %v1160_v16 = vld [vmem:[%s1212_s19 + $0x1d0] ss:$0 sps:$4 sm:$0xff]  }
  0x25   : > { %633 = vmatpush1.bf16.msra.mxu1 %v551_v29  ;;  %v1021_v8 = vcombine.high %v234_v6, %v234_v6  ;;  %v1020_v9 = vcombine.low %v234_v6, %v234_v6  ;;  %v1152_v13 = vld [vmem:[%s1212_s19 + $0x98] ss:$52 sps:$4 sm:$0xff]   ;;  %v1159_v15 = vld [vmem:[%s1212_s19 + $0x168] ss:$52 sps:$4 sm:$0xff]   ;;  %v581_v17 = vsel %vm543_vm0, %v1160_v16, 0 }
  0x26   : > { %1024 = vmatmul.mubr.msk.bf16.vlgmr.msra.gmra.mrb[0].mxu0 %vm539_vm1, %v1238_v26  ;;  %706 = vmatprep.subr.bf16.mxu1 %v1115_v30 }
  0x27   : > { %666 = vmatpush1.bf16.msra.mxu0 %v1091_v27  ;;  %697 = vmatprep.mubr.bf16.mxu0 %v1169_v0  ;;  %v575_v12 = vsel %vm543_vm0, %v1020_v9, 0 }
  0x28   : > { %667 = vmatprep.subr.bf16.mxu0 %v1099_v28  ;;  %1026 = vmatmul.mubr.msk.bf16.vlgmr.msra.gmra.mrb[0].mxu1 %vm539_vm1, %v1238_v26 }
  0x29   : > { %707 = vmatpush1.bf16.msra.mxu1 %v1113_v33  ;;  %738 = vmatprep.mubr.bf16.mxu1 %v1169_v0 }
  0x2a   : > { %708 = vmatprep.subr.bf16.mxu1 %v1119_v34 }
  0x2b   : > { %668 = vmatpush1.bf16.msra.mxu0 %v1097_v31 }
  0x2c   : > { %669 = vmatprep.subr.bf16.mxu0 %v1105_v32 }
  0x2d   : > { %709 = vmatpush1.bf16.msra.mxu1 %v1117_v38 }
  0x2e   : > { %710 = vmatprep.subr.bf16.mxu1 %v1125_v40 }
  0x2f   : > { %670 = vmatpush1.bf16.msra.mxu0 %v1103_v35 }
  0x30   : > { %671 = vmatprep.subr.bf16.mxu0 %v1110_v36 }
  0x31   : > { %711 = vmatpush1.bf16.msra.mxu1 %v1123_v43 }
  0x32   : > { %712 = vmatprep.subr.bf16.mxu1 %v1131_v44 }
  0x33   : > { %672 = vmatpush1.bf16.msra.mxu0 %v1108_v39 }
  0x34   : > { %1027 = vmatprep.subr.msk.bf16.mxu0 %vm543_vm0, %v1015_v41 }
  0x35   : > { %713 = vmatpush1.bf16.msra.mxu1 %v1129_v48 }
  0x36   : > { %1029 = vmatprep.subr.msk.bf16.mxu1 %vm543_vm0, %v1017_v49 }
  0x37   : > { %674 = vmatpush1.bf16.msra.mxu0 %v557_v46 }
  0x38   : > { %747 = vmatprep.subr.bf16.mxu0 %v1122_v47 }
  0x39   : > { %715 = vmatpush1.bf16.msra.mxu1 %v563_v53 }
  0x3a   : > { %1028 = vmatmul.mubr.msk.bf16.vlgmr.msra.gmra.mrb[4].mxu0 %vm539_vm1, %v1238_v26  ;;  %788 = vmatprep.subr.bf16.mxu1 %v1143_v54 }
  0x3b   : > { %748 = vmatpush1.bf16.msra.mxu0 %v1120_v51  ;;  %779 = vmatprep.mubr.bf16.mxu0 %v1169_v0 }
  0x3c   : > { %749 = vmatprep.subr.bf16.mxu0 %v1128_v52  ;;  %1030 = vmatmul.mubr.msk.bf16.vlgmr.msra.gmra.mrb[4].mxu1 %vm539_vm1, %v1238_v26 }
  0x3d   : > { %789 = vmatpush1.bf16.msra.mxu1 %v1141_v57  ;;  %820 = vmatprep.mubr.bf16.mxu1 %v1169_v0  ;;  %v569_v0 = vsel %vm543_vm0, %v1018_v3, 0 }
  0x3e   : > { %790 = vmatprep.subr.bf16.mxu1 %v1147_v58 }
  0x3f   : > { %750 = vmatpush1.bf16.msra.mxu0 %v1126_v55 }
  0x40   : > { %751 = vmatprep.subr.bf16.mxu0 %v1134_v56 }
  0x41   : > { %791 = vmatpush1.bf16.msra.mxu1 %v1145_v62 }
  0x42   : > { %792 = vmatprep.subr.bf16.mxu1 %v1151_v63 }
  0x43   : > { %752 = vmatpush1.bf16.msra.mxu0 %v1132_v59 }
  0x44   : > { %753 = vmatprep.subr.bf16.mxu0 %v1138_v60 }
  0x45   : > { %793 = vmatpush1.bf16.msra.mxu1 %v1149_v4 }
  0x46   : > { %794 = vmatprep.subr.bf16.mxu1 %v1155_v5 }
  0x47   : > { %754 = vmatpush1.bf16.msra.mxu0 %v1136_v1 }
  0x48   : > { %1031 = vmatprep.subr.msk.bf16.mxu0 %vm543_vm0, %v1019_v2 }
  0x49   : > { %795 = vmatpush1.bf16.msra.mxu1 %v1153_v7 }
  0x4a   : > { %1033 = vmatprep.subr.msk.bf16.mxu1 %vm543_vm0, %v1021_v8 }
  0x4b   : > { %756 = vmatpush1.bf16.msra.mxu0 %v569_v0 }
  0x4c   : > { %1044 = vmatprep.subr.bf16.mxu0 %v1170_v11 }
  0x4d   : > { %797 = vmatpush1.bf16.msra.mxu1 %v575_v12 }
  0x4e   : > { %1032 = vmatmul.mubr.msk.bf16.vlgmr.msra.gmra.mrb[8].mxu0 %vm539_vm1, %v1238_v26 }
  0x4f   : > { %1045 = vmatpush3.bf16.msra.mxu0 %v1148_v10  ;;  %1054 = vmatprep.mubr.msk.bf16.mxu0 %vm1171_vm2, %v1170_v11 }
  0x50   : > { %1046 = vmatprep.subr.bf16.mxu0 %v1170_v11  ;;  %1034 = vmatmul.mubr.msk.bf16.vlgmr.msra.gmra.mrb[8].mxu1 %vm539_vm1, %v1238_v26 }
  0x53   : > { %1047 = vmatpush3.bf16.msra.mxu0 %v1152_v13 }
  0x54   : > { %1048 = vmatprep.subr.bf16.mxu0 %v1170_v11 }
  0x57   : > { %1049 = vmatpush3.bf16.msra.mxu0 %v1156_v14 }
  0x58   : > { %1050 = vmatprep.subr.bf16.mxu0 %v1170_v11 }
  0x5b   : > { %1051 = vmatpush3.bf16.msra.mxu0 %v1159_v15 }
  0x5c   : > { %1052 = vmatprep.subr.bf16.mxu0 %v1170_v11 }
  0x5f   : > { %1053 = vmatpush3.bf16.msra.mxu0 %v581_v17 }
  0x62   : > { %1055 = vmatmul.mubr.msk.bf16.vlgmr.msra.gmra.mrb[12].mxu0 %vm539_vm1, %v1238_v26 }
  0x87   : > { %v1309_v18 = vpop.permute.xlu0 %239 }
  0xf9   : > { %v617_v19 = vpop.f32.mrb[0].mxu0 }
  0xfa   : > { %v618_v20 = vadd.f32 %v617_v19, %v1309_v18  ;;  %v619_v21 = vpop.f32.mrb[1].mxu0 }
  0xfb   : > { %v620_v22 = vadd.f32 %v619_v21, %v1309_v18  ;;  %v621_v23 = vpop.f32.mrb[2].mxu0  ;;  %v658_v27 = vpop.f32.mrb[0].mxu1 }
  0xfc   : > { %v869_v24 = vmax.f32 %v618_v20, 0.0  ;;  %v622_v25 = vpop.f32.mrb[3].mxu0  ;;  %v659_v28 = vadd.f32 %v658_v27, %v1309_v18  ;;  %v660_v29 = vpop.f32.mrb[1].mxu1 }
  0xfd   : > { %v870_v26 = vmax.f32 %v620_v22, 0.0  ;;  %v661_v30 = vadd.f32 %v660_v29, %v1309_v18  ;;  %v662_v31 = vpop.f32.mrb[2].mxu1 }
  0xfe   : > { %882 = vst [vmem:[%s1316_s25] sm:$0xff] %v869_v24  ;;  %v871_v32 = vmax.f32 %v659_v28, 0.0  ;;  %v663_v33 = vpop.f32.mrb[3].mxu1 }
  0xff   : > { %883 = vst [vmem:[%s1316_s25 + $0x8] sm:$0xff] %v870_v26  ;;  %v872_v34 = vmax.f32 %v661_v30, 0.0 }
 0x100   : > { %884 = vst [vmem:[%s1316_s25 + $0x10] sm:$0xff] %v871_v32 }
 0x101   : > { %885 = vst [vmem:[%s1316_s25 + $0x18] sm:$0xff] %v872_v34 }
 0x10d   : > { %v699_v35 = vpop.f32.mrb[4].mxu0 }
 0x10e   : > { %v700_v36 = vadd.f32 %v699_v35, %v1309_v18  ;;  %v701_v37 = vpop.f32.mrb[5].mxu0 }
 0x10f   : > { %v702_v38 = vadd.f32 %v701_v37, %v1309_v18  ;;  %v703_v39 = vpop.f32.mrb[6].mxu0  ;;  %v740_v43 = vpop.f32.mrb[4].mxu1 }
 0x110   : > { %v873_v40 = vmax.f32 %v700_v36, 0.0  ;;  %v704_v41 = vpop.f32.mrb[7].mxu0  ;;  %v741_v44 = vadd.f32 %v740_v43, %v1309_v18  ;;  %v742_v45 = vpop.f32.mrb[5].mxu1 }
 0x111   : > { %v874_v42 = vmax.f32 %v702_v38, 0.0  ;;  %v743_v46 = vadd.f32 %v742_v45, %v1309_v18  ;;  %v744_v47 = vpop.f32.mrb[6].mxu1 }
 0x112   : > { %886 = vst [vmem:[%s1316_s25 + $0x20] sm:$0xff] %v873_v40  ;;  %v875_v48 = vmax.f32 %v741_v44, 0.0  ;;  %v745_v49 = vpop.f32.mrb[7].mxu1 }
 0x113   : > { %887 = vst [vmem:[%s1316_s25 + $0x28] sm:$0xff] %v874_v42  ;;  %v876_v50 = vmax.f32 %v743_v46, 0.0 }
 0x114   : > { %888 = vst [vmem:[%s1316_s25 + $0x30] sm:$0xff] %v875_v48 }
 0x115   : > { %889 = vst [vmem:[%s1316_s25 + $0x38] sm:$0xff] %v876_v50 }
 0x121   : > { %v781_v51 = vpop.f32.mrb[8].mxu0 }
 0x122   : > { %v782_v52 = vadd.f32 %v781_v51, %v1309_v18  ;;  %v783_v53 = vpop.f32.mrb[9].mxu0 }
 0x123   : > { %v784_v54 = vadd.f32 %v783_v53, %v1309_v18  ;;  %v785_v55 = vpop.f32.mrb[10].mxu0  ;;  %v822_v59 = vpop.f32.mrb[8].mxu1 }
 0x124   : > { %v877_v56 = vmax.f32 %v782_v52, 0.0  ;;  %v786_v57 = vpop.f32.mrb[11].mxu0  ;;  %v823_v60 = vadd.f32 %v822_v59, %v1309_v18  ;;  %v824_v61 = vpop.f32.mrb[9].mxu1 }
 0x125   : > { %v878_v58 = vmax.f32 %v784_v54, 0.0  ;;  %v825_v62 = vadd.f32 %v824_v61, %v1309_v18  ;;  %v826_v63 = vpop.f32.mrb[10].mxu1 }
 0x126   : > { %890 = vst [vmem:[%s1316_s25 + $0x40] sm:$0xff] %v877_v56  ;;  %v879_v1 = vmax.f32 %v823_v60, 0.0  ;;  %v827_v2 = vpop.f32.mrb[11].mxu1 }
 0x127   : > { %891 = vst [vmem:[%s1316_s25 + $0x48] sm:$0xff] %v878_v58  ;;  %v880_v3 = vmax.f32 %v825_v62, 0.0 }
 0x128   : > { %892 = vst [vmem:[%s1316_s25 + $0x50] sm:$0xff] %v879_v1 }
 0x129   : > { %893 = vst [vmem:[%s1316_s25 + $0x58] sm:$0xff] %v880_v3 }
 0x135   : > { %v863_v4 = vpop.f32.mrb[12].mxu0 }
 0x136   : > { %v864_v5 = vadd.f32 %v863_v4, %v1309_v18  ;;  %v1056_v6 = vpop.f32.mrb[13].mxu0 }
 0x137   : > { %v866_v0 = vpop.f32.mrb[14].mxu0 }
 0x138   : > { %v881_v7 = vmax.f32 %v864_v5, 0.0  ;;  %v1057_v8 = vpop.f32.mrb[15].mxu0 }
 0x13a   : > { %895 = vst.msk [vmem:[%s1316_s25 + $0x60] sm:$0xff] %vm894_vm3, %v881_v7 }
 0x13b PF: > { %s13_s12 = sadd.s32 1, %s1167_s12  }
 0x13c   : > { %p10_p4 = scmp.ge.s32.totalorder %s13_s12, 4  }
 0x13e   :  { %12 = sbr.rel (!%p10_p4) target bundleno = 1 (0x1), region = 62 }

// kernel: convnet_forward.6
= control target key start
LH: loop header
LB: loop body
LE: loop exit
PB: predicated region body
PF: predicated region fallthrough
CT: control target
= control target key end

     0   :  { %s553_s12 = smov 0   ;;  %s580_s0 = inlined_call_operand.vmem [shape: bf16[2,72,400], index: 0, kind: input, shape index: {}]   ;;  %s581_s1 = inlined_call_operand.vmem [shape: bf16[8,72], index: 1, kind: input, shape index: {}]   ;;  %s582_s2 = inlined_call_operand.vmem [shape: f32[8,1], index: 2, kind: input, shape index: {}]   ;;  %s583_s3 = inlined_call_operand.vmem [shape: f32[2,8,400], index: 3, kind: output, shape index: {}]  }
   0x1 LB: > { %s450_s13 = sadd.s32 4294967295, %s530_s12   ;;  %p454_p0 = scmp.ge.s32.totalorder %s530_s12, 1  ;;  %s530_s12 = sphi %s553_s12, %s13_s12  }
   0x2   : > { %p137_p1 = scmp.lt.s32.totalorder %s530_s12, 3 }
   0x4   : > { %p138_p2 = pnand %p454_p0, %p137_p1 }
   0x5   : > { %p161_p3 = scmp.lt.s32.totalorder (!%p138_p2), %s450_s13, 1  ;;  %v532_v0 = vmov (!%p138_p2), 0   ;;  %v191_v1 = vld [vmem:[%s582_s2] sm:$0xff] (!%p138_p2)  ;;  %vm291_vm0 = vcmask (!%p138_p2), 1043456   ;;  %vm287_vm1 = vcmask (!%p138_p2), 588800   ;;  %vm393_vm2 = vcmask (!%p138_p2), 130048  }
   0x6   : > { %141 = sbr.rel (%p138_p2) target bundleno = 256 (0x100), region = 32  ;;  %336 = vmatprep.mubr.bf16.mxu0 (!%p138_p2), %v532_v0  ;;  %377 = vmatprep.mubr.bf16.mxu1 (!%p138_p2), %v532_v0  ;;  %v172_v26 = vld [vmem:[%s581_s1] sm:$0xf] (!%p138_p2) }
   0x7   : > { %495 = vset.pattern.permute.xlu0 (!%p138_p2), %v532_v0 }
   0x8   : > { %194 = vperm.xlu0 (!%p138_p2), %495, %v191_v1  }
   0xd   : > { %s585_s13 = smov (!%p161_p3, %s450_s13), 1 }
   0xe   : > { %s485_s16 = smul.u32 144, %s585_s13  ;;  %s484_s22 = sshll.u32 %s585_s13, 5 }
   0xf   : > { %s170_s25 = scalar_lea.vmem %s583_s3, %s484_s22 }
  0x10   : > { %s165_s19 = scalar_lea.vmem %s580_s0, %s485_s16 }
  0x11   : > { %v496_v2 = vld [vmem:[%s165_s19 + $0x4] ss:$16 sps:$4 sm:$0xff]   ;;  %v498_v3 = vld [vmem:[%s165_s19 + $0xc] ss:$16 sps:$4 sm:$0xff]   ;;  %v500_v4 = vld [vmem:[%s165_s19] ss:$16 sps:$4 sm:$0xff]  }
  0x12   : > { %304 = vmatprep.subr.bf16.mxu0 %v496_v2  ;;  %v501_v5 = vld [vmem:[%s165_s19 + $0x8] ss:$16 sps:$4 sm:$0xff]   ;;  %345 = vmatprep.subr.bf16.mxu1 %v498_v3  ;;  %v502_v6 = vld [vmem:[%s165_s19 + $0x24] ss:$16 sps:$4 sm:$0xff]   ;;  %v504_v7 = vld [vmem:[%s165_s19 + $0x2c] ss:$16 sps:$4 sm:$0xff]  }
  0x13   : > { %305 = vmatpush1.bf16.msra.mxu0 %v500_v4  ;;  %346 = vmatpush1.bf16.msra.mxu1 %v501_v5  ;;  %v506_v8 = vld [vmem:[%s165_s19 + $0x20] ss:$16 sps:$4 sm:$0xff]   ;;  %v507_v9 = vld [vmem:[%s165_s19 + $0x28] ss:$16 sps:$4 sm:$0xff]   ;;  %v508_v10 = vld [vmem:[%s165_s19 + $0x44] ss:$16 sps:$4 sm:$0xff]  }
  0x14   : > { %306 = vmatprep.subr.bf16.mxu0 %v502_v6  ;;  %347 = vmatprep.subr.bf16.mxu1 %v504_v7  ;;  %v510_v11 = vld [vmem:[%s165_s19 + $0x4c] ss:$16 sps:$4 sm:$0xff]   ;;  %v512_v12 = vld [vmem:[%s165_s19 + $0x40] ss:$16 sps:$4 sm:$0xff]   ;;  %v513_v13 = vld [vmem:[%s165_s19 + $0x48] ss:$16 sps:$4 sm:$0xff]  }
  0x15   : > { %v514_v14 = vld [vmem:[%s165_s19 + $0x64] ss:$16 sps:$4 sm:$0xff]   ;;  %v516_v15 = vld [vmem:[%s165_s19 + $0x6c] ss:$16 sps:$4 sm:$0xff]   ;;  %v518_v18 = vld [vmem:[%s165_s19 + $0x60] ss:$16 sps:$4 sm:$0xff]  }
  0x16   : > { %v189_v16 = vld [vmem:[%s165_s19 + $0x80] sm:$0xff]  ;;  %v190_v17 = vld [vmem:[%s165_s19 + $0x88] sm:$0xff] }
  0x17   : > { %307 = vmatpush1.bf16.msra.mxu0 %v506_v8  ;;  %348 = vmatpush1.bf16.msra.mxu1 %v507_v9  ;;  %v519_v19 = vld [vmem:[%s165_s19 + $0x68] ss:$16 sps:$4 sm:$0xff]   ;;  %v475_v20 = vcombine.high %v189_v16, %v189_v16  ;;  %v477_v21 = vcombine.high %v190_v17, %v190_v17  ;;  %v474_v22 = vcombine.low %v189_v16, %v189_v16 }
  0x18   : > { %308 = vmatprep.subr.bf16.mxu0 %v508_v10  ;;  %349 = vmatprep.subr.bf16.mxu1 %v510_v11  ;;  %v476_v23 = vcombine.low %v190_v17, %v190_v17 }
  0x19   : > { %v293_v24 = vsel %vm291_vm0, %v474_v22, 0 }
  0x1a   : > { %v299_v25 = vsel %vm291_vm0, %v476_v23, 0 }
  0x1b   : > { %309 = vmatpush1.bf16.msra.mxu0 %v512_v12  ;;  %350 = vmatpush1.bf16.msra.mxu1 %v513_v13 }
  0x1c   : > { %310 = vmatprep.subr.bf16.mxu0 %v514_v14  ;;  %351 = vmatprep.subr.bf16.mxu1 %v516_v15 }
  0x1f   : > { %311 = vmatpush1.bf16.msra.mxu0 %v518_v18  ;;  %352 = vmatpush1.bf16.msra.mxu1 %v519_v19 }
  0x20   : > { %478 = vmatprep.subr.msk.bf16.mxu0 %vm291_vm0, %v475_v20  ;;  %480 = vmatprep.subr.msk.bf16.mxu1 %vm291_vm0, %v477_v21 }
  0x23   : > { %313 = vmatpush1.bf16.msra.mxu0 %v293_v24  ;;  %354 = vmatpush1.bf16.msra.mxu1 %v299_v25 }
  0x26   : > { %479 = vmatmul.mubr.msk.bf16.vlgmr.msra.gmra.mrb[0].mxu0 %vm287_vm1, %v172_v26  ;;  %481 = vmatmul.mubr.msk.bf16.vlgmr.msra.gmra.mrb[0].mxu1 %vm287_vm1, %v172_v26 }
  0x87   : > { %v195_v27 = vpop.permute.xlu0 %194 }
  0xf9   : > { %v338_v28 = vpop.f32.mrb[0].mxu0  ;;  %v379_v29 = vpop.f32.mrb[0].mxu1 }
  0xfa   : > { %v339_v30 = vadd.f32 %v338_v28, %v195_v27  ;;  %v380_v31 = vadd.f32 %v379_v29, %v195_v27  ;;  %v340_v32 = vpop.f32.mrb[1].mxu0  ;;  %v381_v33 = vpop.f32.mrb[1].mxu1 }
  0xfb   : > { %v341_v34 = vadd.f32 %v340_v32, %v195_v27  ;;  %v382_v35 = vadd.f32 %v381_v33, %v195_v27  ;;  %v342_v36 = vpop.f32.mrb[2].mxu0  ;;  %v383_v37 = vpop.f32.mrb[2].mxu1 }
  0xfc   : > { %v386_v38 = vmax.f32 %v339_v30, 0.0  ;;  %v388_v39 = vmax.f32 %v380_v31, 0.0  ;;  %v343_v40 = vpop.f32.mrb[3].mxu0  ;;  %v384_v41 = vpop.f32.mrb[3].mxu1 }
  0xfd   : > { %v387_v42 = vmax.f32 %v341_v34, 0.0  ;;  %v389_v43 = vmax.f32 %v382_v35, 0.0 }
  0xfe   : > { %390 = vst [vmem:[%s170_s25] sm:$0xff] %v386_v38  ;;  %392 = vst [vmem:[%s170_s25 + $0x10] sm:$0xff] %v388_v39 }
  0xff   : > { %391 = vst [vmem:[%s170_s25 + $0x8] sm:$0xff] %v387_v42  ;;  %394 = vst.msk [vmem:[%s170_s25 + $0x18] sm:$0xff] %vm393_vm2, %v389_v43 }
 0x100 PF: > { %s13_s12 = sadd.s32 1, %s530_s12  }
 0x101   : > { %p10_p4 = scmp.ge.s32.totalorder %s13_s12, 4  }
 0x103   :  { %12 = sbr.rel (!%p10_p4) target bundleno = 1 (0x1), region = 62 }

// kernel: convnet_forward.7
= control target key start
LH: loop header
LB: loop body
LE: loop exit
PB: predicated region body
PF: predicated region fallthrough
CT: control target
= control target key end

     0   :  { %s401_s12 = smov 0   ;;  %s428_s0 = inlined_call_operand.vmem [shape: bf16[2,72,100], index: 0, kind: input, shape index: {}]   ;;  %s429_s1 = inlined_call_operand.vmem [shape: bf16[8,72], index: 1, kind: input, shape index: {}]   ;;  %s430_s2 = inlined_call_operand.vmem [shape: f32[8,1], index: 2, kind: input, shape index: {}]   ;;  %s431_s3 = inlined_call_operand.vmem [shape: f32[2,8,100], index: 3, kind: output, shape index: {}]  }
   0x1 LB: > { %s317_s13 = sadd.s32 4294967295, %s376_s12   ;;  %p321_p0 = scmp.ge.s32.totalorder %s376_s12, 1  ;;  %s376_s12 = sphi %s401_s12, %s13_s12  }
   0x2   : > { %p137_p1 = scmp.lt.s32.totalorder %s376_s12, 3 }
   0x4   : > { %p138_p2 = pnand %p321_p0, %p137_p1 }
   0x5   : > { %p160_p3 = scmp.lt.s32.totalorder (!%p138_p2), %s317_s13, 1  ;;  %v378_v0 = vmov (!%p138_p2), 0.0   ;;  %vm379_vm0 = vmmov (!%p138_p2), 0   ;;  %v180_v1 = vld [vmem:[%s430_s2] sm:$0xff] (!%p138_p2)  ;;  %v380_v2 = vmov (!%p138_p2), 0   ;;  %vm217_vm1 = vcmask (!%p138_p2), 1043456  }
   0x6   : > { %141 = sbr.rel (%p138_p2) target bundleno = 254 (0xfe), region = 32  ;;  %338 = vmatprep.subr.bf16.mxu0 (!%p138_p2), %v378_v0  ;;  %348 = vmatprep.mubr.msk.bf16.mxu0 (!%p138_p2), %vm379_vm0, %v378_v0  ;;  %v170_v9 = vld [vmem:[%s429_s1] sm:$0xf] (!%p138_p2)  ;;  %vm213_vm2 = vcmask (!%p138_p2), 588800   ;;  %vm262_vm3 = vcmask (!%p138_p2), 818176  }
   0x7   : > { %364 = vset.pattern.permute.xlu0 (!%p138_p2), %v380_v2 }
   0x8   : > { %183 = vperm.xlu0 (!%p138_p2), %364, %v180_v1  }
   0xd   : > { %s433_s13 = smov (!%p160_p3, %s317_s13), 1 }
   0xe   : > { %s352_s16 = smul.u32 36, %s433_s13  ;;  %s323_s22 = sshll.u32 %s433_s13, 3 }
   0xf   : > { %s168_s25 = scalar_lea.vmem %s431_s3, %s323_s22 }
  0x10   : > { %s164_s19 = scalar_lea.vmem %s428_s0, %s352_s16 }
  0x11   : > { %v365_v3 = vld [vmem:[%s164_s19] sm:$0xff]   ;;  %v366_v4 = vld [vmem:[%s164_s19 + $0x8] sm:$0xff]   ;;  %v367_v5 = vld [vmem:[%s164_s19 + $0x10] sm:$0xff]  }
  0x12   : > { %339 = vmatpush3.bf16.msra.mxu0 %v365_v3  ;;  %v368_v6 = vld [vmem:[%s164_s19 + $0x18] sm:$0xff]   ;;  %v369_v7 = vld [vmem:[%s164_s19 + $0x20] ss:$0 sps:$4 sm:$0xff]  }
  0x13   : > { %340 = vmatprep.subr.bf16.mxu0 %v378_v0  ;;  %v219_v8 = vsel %vm217_vm1, %v369_v7, 0 }
  0x16   : > { %341 = vmatpush3.bf16.msra.mxu0 %v366_v4 }
  0x17   : > { %342 = vmatprep.subr.bf16.mxu0 %v378_v0 }
  0x1a   : > { %343 = vmatpush3.bf16.msra.mxu0 %v367_v5 }
  0x1b   : > { %344 = vmatprep.subr.bf16.mxu0 %v378_v0 }
  0x1e   : > { %345 = vmatpush3.bf16.msra.mxu0 %v368_v6 }
  0x1f   : > { %346 = vmatprep.subr.bf16.mxu0 %v378_v0 }
  0x22   : > { %347 = vmatpush3.bf16.msra.mxu0 %v219_v8 }
  0x25   : > { %349 = vmatmul.mubr.msk.bf16.vlgmr.msra.gmra.mrb[0].mxu0 %vm213_vm2, %v170_v9 }
  0x87   : > { %v184_v10 = vpop.permute.xlu0 %183 }
  0xf8   : > { %v255_v11 = vpop.f32.mrb[0].mxu0 }
  0xf9   : > { %v256_v12 = vadd.f32 %v255_v11, %v184_v10  ;;  %v350_v13 = vpop.f32.mrb[1].mxu0 }
  0xfa   : > { %v258_v14 = vpop.f32.mrb[2].mxu0 }
  0xfb   : > { %v261_v15 = vmax.f32 %v256_v12, 0.0  ;;  %v351_v16 = vpop.f32.mrb[3].mxu0 }
  0xfd   : > { %263 = vst.msk [vmem:[%s168_s25] sm:$0xff] %vm262_vm3, %v261_v15 }
  0xfe PF: > { %s13_s12 = sadd.s32 1, %s376_s12  }
  0xff   : > { %p10_p4 = scmp.ge.s32.totalorder %s13_s12, 4  }
 0x101   :  { %12 = sbr.rel (!%p10_p4) target bundleno = 1 (0x1), region = 62 }

</bundles_post_ra>
